<compile_context>
chip_gen: v7x
topology: tpu7x:2x2x1
jax: 0.10.0
libtpu: 0.0.40
codegen_flags: <defaults>
</compile_context>

<pallas_src>
import jax
import jax.numpy as jnp
from jax import lax
from jax.experimental import pallas as pl
from jax.experimental.pallas import tpu as pltpu

BN_EPS = 1e-5
_VMEM_LIMIT = 32 * 1024 * 1024  # explicit scoped-VMEM limit; safe on v5e/v6e/v7x


def _round_up(a, b):
    return (a + b - 1) // b * b


# ---------------------------------------------------------------------------
# Pass 1: tiled im2col matmul (the convolution) + per-tile BN partial stats.
# ---------------------------------------------------------------------------
def _conv_matmul_stats_kernel(p_ref, w_ref, y_ref, s_ref, ss_ref):
    # p_ref : (TM, Kp)    im2col patch tile
    # w_ref : (Kp, Cp)    reshaped conv weight (zero padded)
    # y_ref : (TM, Cp)    conv output tile (pre-BN)
    # s_ref : (1, 1, Cp)  per-tile partial sum over rows
    # ss_ref: (1, 1, Cp)  per-tile partial sum of squares over rows
    y = jnp.dot(p_ref[...], w_ref[...], preferred_element_type=jnp.float32)
    y_ref[...] = y
    s_ref[...] = jnp.sum(y, axis=0, keepdims=True)[None]
    ss_ref[...] = jnp.sum(y * y, axis=0, keepdims=True)[None]


# ---------------------------------------------------------------------------
# Pass 2: fused BatchNorm affine (pre-folded scale/shift) + ReLU, in place.
# ---------------------------------------------------------------------------
def _bn_relu_kernel(y_ref, scale_ref, shift_ref, o_ref):
    o_ref[...] = jnp.maximum(y_ref[...] * scale_ref[...] + shift_ref[...], 0.0)


# ---------------------------------------------------------------------------
# MaxPool2d(2, 2): elementwise max over the four strided views.
# ---------------------------------------------------------------------------
def _max4_kernel(a_ref, b_ref, c_ref, d_ref, o_ref):
    o_ref[...] = jnp.maximum(jnp.maximum(a_ref[...], b_ref[...]),
                             jnp.maximum(c_ref[...], d_ref[...]))


def _choose_tile_m(m, k_pad, c_pad, tile_m):
    """M tile: multiple of 8, capped by a conservative ~20 MiB VMEM budget
    (double-buffered patch + output tiles and the replicated weight block),
    leaving headroom even on v7x's 64 MiB VMEM."""
    tm = min(tile_m, _round_up(m, 8))
    budget = 20 * 1024 * 1024

    def footprint(t):
        return 4 * (2 * t * k_pad + 2 * t * c_pad + 2 * k_pad * c_pad + 4 * c_pad)

    while tm > 8 and footprint(tm) > budget:
        tm = max(8, tm // 2)
    return tm


def _im2col_nhwc(x, kh, kw, pad):
    """(N, H, W, C) -> (N*OH*OW, kh*kw*C).  Patch columns ordered (ki, kj, c),
    matching weight.transpose(2, 3, 1, 0).reshape(kh*kw*C, Cout)."""
    n, h, w, c = x.shape
    xp = jnp.pad(x, ((0, 0), (pad, pad), (pad, pad), (0, 0)))
    oh = h + 2 * pad - kh + 1
    ow = w + 2 * pad - kw + 1
    cols = [xp[:, i:i + oh, j:j + ow, :] for i in range(kh) for j in range(kw)]
    p = jnp.stack(cols, axis=3)                       # (N, OH, OW, kh*kw, C)
    return p.reshape(n * oh * ow, kh * kw * c), oh, ow


def conv_bn_relu_nhwc(x, weight, gamma, beta, *, pad=1, tile_m=256):
    """Conv2d(3x3, stride=1, padding=pad; bias is a train-mode-BN no-op and is
    dropped) + BatchNorm2d(training statistics) + ReLU, NHWC in / NHWC out."""
    n, h, w, cin = x.shape
    cout, _, kh, kw = weight.shape

    patches, oh, ow = _im2col_nhwc(x, kh, kw, pad)    # (M, K)
    m, k = patches.shape
    kp = _round_up(k, 128)     # aligned MXU contraction feed
    cp = _round_up(cout, 128)  # lane-dense output / epilogue

    tm = _choose_tile_m(m, kp, cp, tile_m)
    mp = _round_up(m, tm)
    nt = mp // tm

    patches = jnp.pad(patches, ((0, mp - m), (0, kp - k)))
    w2d = weight.transpose(2, 3, 1, 0).reshape(k, cout)
    w2d = jnp.pad(w2d, ((0, kp - k), (0, cp - cout)))

    cost = pl.CostEstimate(
        flops=2 * mp * kp * cp,
        transcendentals=0,
        bytes_accessed=4 * (mp * kp + kp * cp + mp * cp))

    y, s_part, ss_part = pl.pallas_call(
        _conv_matmul_stats_kernel,
        out_shape=(jax.ShapeDtypeStruct((mp, cp), jnp.float32),
                   jax.ShapeDtypeStruct((nt, 1, cp), jnp.float32),
                   jax.ShapeDtypeStruct((nt, 1, cp), jnp.float32)),
        grid=(nt,),
        in_specs=[pl.BlockSpec((tm, kp), lambda i: (i, 0)),
                  pl.BlockSpec((kp, cp), lambda i: (0, 0))],
        out_specs=(pl.BlockSpec((tm, cp), lambda i: (i, 0)),
                   pl.BlockSpec((1, 1, cp), lambda i: (i, 0, 0)),
                   pl.BlockSpec((1, 1, cp), lambda i: (i, 0, 0))),
        compiler_params=pltpu.CompilerParams(
            dimension_semantics=("parallel",),
            vmem_limit_bytes=_VMEM_LIMIT),
        cost_estimate=cost,
    )(patches, w2d)

    # BN training-mode statistics over the TRUE M (= N*OH*OW) rows.  Zero-padded
    # rows contribute exactly 0 to both partials (no conv bias), so this is exact.
    s = jnp.sum(s_part[:, 0, :], axis=0)
    ss = jnp.sum(ss_part[:, 0, :], axis=0)
    mean = s / m
    var = jnp.maximum(ss / m - mean * mean, 0.0)
    gamma_p = jnp.pad(gamma, (0, cp - cout))
    beta_p = jnp.pad(beta, (0, cp - cout))
    scale = (gamma_p * lax.rsqrt(var + BN_EPS)).reshape(1, cp)
    shift = (beta_p - mean * scale[0]).reshape(1, cp)

    out = pl.pallas_call(
        _bn_relu_kernel,
        out_shape=jax.ShapeDtypeStruct((mp, cp), jnp.float32),
        grid=(nt,),
        in_specs=[pl.BlockSpec((tm, cp), lambda i: (i, 0)),
                  pl.BlockSpec((1, cp), lambda i: (0, 0)),
                  pl.BlockSpec((1, cp), lambda i: (0, 0))],
        out_specs=pl.BlockSpec((tm, cp), lambda i: (i, 0)),
        input_output_aliases={0: 0},   # apply BN/ReLU in place over y
        compiler_params=pltpu.CompilerParams(
            dimension_semantics=("parallel",),
            vmem_limit_bytes=_VMEM_LIMIT),
    )(y, scale, shift)

    return out[:m, :cout].reshape(n, oh, ow, cout)


def maxpool2x2_nhwc(x, *, tile_m=256):
    """MaxPool2d(kernel=2, stride=2) on NHWC via a tiled elementwise-max kernel."""
    n, h, w, c = x.shape
    oh, ow = h // 2, w // 2
    m = n * oh * ow
    views = [x[:, 0::2, 0::2, :], x[:, 0::2, 1::2, :],
             x[:, 1::2, 0::2, :], x[:, 1::2, 1::2, :]]
    views = [v.reshape(m, c) for v in views]

    tm = min(tile_m, _round_up(m, 8))
    mp = _round_up(m, tm)
    if mp != m:
        views = [jnp.pad(v, ((0, mp - m), (0, 0))) for v in views]
    nt = mp // tm

    spec = pl.BlockSpec((tm, c), lambda i: (i, 0))
    out = pl.pallas_call(
        _max4_kernel,
        out_shape=jax.ShapeDtypeStruct((mp, c), jnp.float32),
        grid=(nt,),
        in_specs=[spec] * 4,
        out_specs=spec,
        compiler_params=pltpu.CompilerParams(
            dimension_semantics=("parallel",),
            vmem_limit_bytes=_VMEM_LIMIT),
    )(*views)
    return out[:m].reshape(n, oh, ow, c)


def encoder_block_forward(x_nhwc, p):
    h = conv_bn_relu_nhwc(x_nhwc, p["w1"], p["bn_g1"], p["bn_b1"])
    h = conv_bn_relu_nhwc(h, p["w2"], p["bn_g2"], p["bn_b2"])
    return h, maxpool2x2_nhwc(h)


def aunet_encoder_forward(x_nchw, level_params):
    """AUNetEncoder.forward: returns (features, x); features[i] is the pre-pool
    output of level i in NCHW (get_features() would be features[::-1])."""
    x = jnp.transpose(x_nchw, (0, 2, 3, 1))           # internal NHWC layout
    features = []
    for p in level_params:
        ft, x = encoder_block_forward(x, p)
        features.append(jnp.transpose(ft, (0, 3, 1, 2)))
    return features, jnp.transpose(x, (0, 3, 1, 2))


# ---------------------------------------------------------------------------
# Pure-JAX reference (includes the conv bias; BN train-mode stats; maxpool).
# ---------------------------------------------------------------------------
def _conv_bn_relu_ref(x, w, b, gamma, beta):
    y = lax.conv_general_dilated(
        x, w, window_strides=(1, 1), padding=((1, 1), (1, 1)),
        dimension_numbers=("NCHW", "OIHW", "NCHW"),
        precision=lax.Precision.HIGHEST)
    y = y + b.reshape(1, -1, 1, 1)   # cancelled by train-mode BN below
    mean = jnp.mean(y, axis=(0, 2, 3), keepdims=True)
    var = jnp.mean((y - mean) ** 2, axis=(0, 2, 3), keepdims=True)
    y = (y - mean) / jnp.sqrt(var + BN_EPS)
    y = y * gamma.reshape(1, -1, 1, 1) + beta.reshape(1, -1, 1, 1)
    return jnp.maximum(y, 0.0)


def _encoder_ref(x, level_params):
    feats = []
    for p in level_params:
        h = _conv_bn_relu_ref(x, p["w1"], p["cb1"], p["bn_g1"], p["bn_b1"])
        h = _conv_bn_relu_ref(h, p["w2"], p["cb2"], p["bn_g2"], p["bn_b2"])
        feats.append(h)
        n, c, hh, ww = h.shape
        x = h.reshape(n, c, hh // 2, 2, ww // 2, 2).max(axis=(3, 5))
    return feats, x


if __name__ == "__main__":
    # AUNetEncoder(in_channels=4, depth=2, first_channels=8) on (2, 4, 16, 16).
    N, IN_CH, H, W = 2, 4, 16, 16
    DEPTH, FIRST = 2, 8

    x = jax.random.normal(jax.random.PRNGKey(0), (N, IN_CH, H, W), dtype=jnp.float32)

    def make_block(key, cin, cout):
        ks = jax.random.split(key, 6)
        return {
            "w1": 0.1 * jax.random.normal(ks[0], (cout, cin, 3, 3), dtype=jnp.float32),
            "cb1": 0.05 * jax.random.normal(ks[1], (cout,), dtype=jnp.float32),
            "bn_g1": 1.0 + 0.1 * jax.random.normal(ks[2], (cout,), dtype=jnp.float32),
            "bn_b1": 0.1 * jax.random.normal(ks[3], (cout,), dtype=jnp.float32),
            "w2": 0.1 * jax.random.normal(ks[4], (cout, cout, 3, 3), dtype=jnp.float32),
            "cb2": 0.05 * jax.random.normal(ks[5], (cout,), dtype=jnp.float32),
            "bn_g2": jnp.ones((cout,), dtype=jnp.float32),   # BatchNorm2d default init
            "bn_b2": jnp.zeros((cout,), dtype=jnp.float32),
        }

    keys = jax.random.split(jax.random.PRNGKey(1), DEPTH)
    chans = [(IN_CH, FIRST)] + [(FIRST * 2 ** i, FIRST * 2 ** (i + 1))
                                for i in range(DEPTH - 1)]
    level_params = [make_block(keys[i], ci, co) for i, (ci, co) in enumerate(chans)]

    fwd = jax.jit(aunet_encoder_forward)
    features, out = fwd(x, level_params)
    out = jax.block_until_ready(out)
    features = [jax.block_until_ready(f) for f in features]

    ref_feats, ref_out = _encoder_ref(x, level_params)

    assert out.shape == (N, FIRST * 2 ** (DEPTH - 1), H // 2 ** DEPTH, W // 2 ** DEPTH), out.shape
    for i, (f, rf) in enumerate(zip(features, ref_feats)):
        assert f.shape == rf.shape, (f.shape, rf.shape)
        err = float(jnp.max(jnp.abs(f - rf)))
        assert jnp.allclose(f, rf, atol=5e-4, rtol=5e-4), (i, err)
    err = float(jnp.max(jnp.abs(out - ref_out)))
    assert jnp.allclose(out, ref_out, atol=5e-4, rtol=5e-4), err

    print("KERNEL_OK")
</pallas_src>

<mosaic_0001>
module attributes {stable_mosaic.version = 11 : i64} {
  func.func @_conv_matmul_stats_kernel(%arg0: i32, %arg1: memref<256x128xf32, #tpu.memory_space<vmem>>, %arg2: memref<128x128xf32, #tpu.memory_space<vmem>>, %arg3: memref<256x128xf32, #tpu.memory_space<vmem>>, %arg4: memref<1x1x128xf32, #tpu.memory_space<vmem>>, %arg5: memref<1x1x128xf32, #tpu.memory_space<vmem>>) attributes {dimension_semantics = [#tpu.dimension_semantics<parallel>], iteration_bounds = array<i64: 2>, scalar_prefetch = 0 : i64, scratch_operands = 0 : i64, tpu.core_type = #tpu.core_type<tc>, window_params = [{transform_indices = @transform_0, window_bounds = array<i64: 256, 128>}, {pipeline_mode = #tpu.pipeline_mode<synchronous>, transform_indices = @transform_1, window_bounds = array<i64: 128, 128>}, {transform_indices = @transform_2, window_bounds = array<i64: 256, 128>}, {transform_indices = @transform_3, window_bounds = array<i64: 1, 1, 128>}, {transform_indices = @transform_4, window_bounds = array<i64: 1, 1, 128>}]} {
    %c0 = arith.constant 0 : index
    %c0_0 = arith.constant 0 : index
    %0 = vector.load %arg1[%c0, %c0_0] : memref<256x128xf32, #tpu.memory_space<vmem>>, vector<256x128xf32>
    %c0_1 = arith.constant 0 : index
    %c0_2 = arith.constant 0 : index
    %1 = vector.load %arg2[%c0_1, %c0_2] : memref<128x128xf32, #tpu.memory_space<vmem>>, vector<128x128xf32>
    %cst = arith.constant dense<0.000000e+00> : vector<256x128xf32>
    %2 = tpu.matmul %0, %1, %cst {dimension_numbers = #tpu.dot_dimension_numbers<[1], [0], [0], [1], [0, 0, 1, 1], [], []>} : vector<256x128xf32>, vector<128x128xf32>, vector<256x128xf32> -> vector<256x128xf32>
    %c0_3 = arith.constant 0 : index
    %c0_4 = arith.constant 0 : index
    %3 = vector.load %arg3[%c0_3, %c0_4] : memref<256x128xf32, #tpu.memory_space<vmem>>, vector<256x128xf32>
    tpu.vector_store %arg3[%c0_3, %c0_4], %2 {strides = array<i32>} : memref<256x128xf32, #tpu.memory_space<vmem>>, vector<256x128xf32>,
    %cst_5 = arith.constant dense<0.000000e+00> : vector<128xf32>
    %4 = vector.multi_reduction <add>, %2, %cst_5 [0] : vector<256x128xf32> to vector<128xf32>
    %5 = vector.shape_cast %4 : vector<128xf32> to vector<1x128xf32>
    %6 = vector.shape_cast %5 : vector<1x128xf32> to vector<1x1x128xf32>
    %c0_6 = arith.constant 0 : index
    %c0_7 = arith.constant 0 : index
    %c0_8 = arith.constant 0 : index
    %7 = vector.load %arg4[%c0_6, %c0_7, %c0_8] : memref<1x1x128xf32, #tpu.memory_space<vmem>>, vector<1x1x128xf32>
    tpu.vector_store %arg4[%c0_6, %c0_7, %c0_8], %6 {strides = array<i32>} : memref<1x1x128xf32, #tpu.memory_space<vmem>>, vector<1x1x128xf32>,
    %8 = arith.mulf %2, %2 : vector<256x128xf32>
    %cst_9 = arith.constant dense<0.000000e+00> : vector<128xf32>
    %9 = vector.multi_reduction <add>, %8, %cst_9 [0] : vector<256x128xf32> to vector<128xf32>
    %10 = vector.shape_cast %9 : vector<128xf32> to vector<1x128xf32>
    %11 = vector.shape_cast %10 : vector<1x128xf32> to vector<1x1x128xf32>
    %c0_10 = arith.constant 0 : index
    %c0_11 = arith.constant 0 : index
    %c0_12 = arith.constant 0 : index
    %12 = vector.load %arg5[%c0_10, %c0_11, %c0_12] : memref<1x1x128xf32, #tpu.memory_space<vmem>>, vector<1x1x128xf32>
    tpu.vector_store %arg5[%c0_10, %c0_11, %c0_12], %11 {strides = array<i32>} : memref<1x1x128xf32, #tpu.memory_space<vmem>>, vector<1x1x128xf32>,
    return
  }
  func.func @transform_0(%arg0: i32) -> (i32, i32) {
    %c0_i32 = arith.constant 0 : i32
    %c0_i32_0 = arith.constant 0 : i32
    return %arg0, %c0_i32 : i32, i32
  }
  func.func @transform_1(%arg0: i32) -> (i32, i32) {
    %c0_i32 = arith.constant 0 : i32
    %c0_i32_0 = arith.constant 0 : i32
    %c0_i32_1 = arith.constant 0 : i32
    return %c0_i32, %c0_i32_0 : i32, i32
  }
  func.func @transform_2(%arg0: i32) -> (i32, i32) {
    %c0_i32 = arith.constant 0 : i32
    %c0_i32_0 = arith.constant 0 : i32
    return %arg0, %c0_i32 : i32, i32
  }
  func.func @transform_3(%arg0: i32) -> (i32, i32, i32) {
    %c0_i32 = arith.constant 0 : i32
    %c0_i32_0 = arith.constant 0 : i32
    %c0_i32_1 = arith.constant 0 : i32
    return %arg0, %c0_i32, %c0_i32_0 : i32, i32, i32
  }
  func.func @transform_4(%arg0: i32) -> (i32, i32, i32) {
    %c0_i32 = arith.constant 0 : i32
    %c0_i32_0 = arith.constant 0 : i32
    %c0_i32_1 = arith.constant 0 : i32
    return %arg0, %c0_i32, %c0_i32_0 : i32, i32, i32
  }
}

module attributes {stable_mosaic.version = 11 : i64} {
  func.func @_bn_relu_kernel(%arg0: i32, %arg1: memref<256x128xf32, #tpu.memory_space<vmem>>, %arg2: memref<1x128xf32, #tpu.memory_space<vmem>>, %arg3: memref<1x128xf32, #tpu.memory_space<vmem>>, %arg4: memref<256x128xf32, #tpu.memory_space<vmem>>) attributes {dimension_semantics = [#tpu.dimension_semantics<parallel>], iteration_bounds = array<i64: 2>, scalar_prefetch = 0 : i64, scratch_operands = 0 : i64, tpu.core_type = #tpu.core_type<tc>, window_params = [{transform_indices = @transform_0, window_bounds = array<i64: 256, 128>}, {pipeline_mode = #tpu.pipeline_mode<synchronous>, transform_indices = @transform_1, window_bounds = array<i64: 1, 128>}, {pipeline_mode = #tpu.pipeline_mode<synchronous>, transform_indices = @transform_2, window_bounds = array<i64: 1, 128>}, {transform_indices = @transform_3, window_bounds = array<i64: 256, 128>}]} {
    %c0 = arith.constant 0 : index
    %c0_0 = arith.constant 0 : index
    %0 = vector.load %arg1[%c0, %c0_0] : memref<256x128xf32, #tpu.memory_space<vmem>>, vector<256x128xf32>
    %c0_1 = arith.constant 0 : index
    %c0_2 = arith.constant 0 : index
    %1 = vector.load %arg2[%c0_1, %c0_2] : memref<1x128xf32, #tpu.memory_space<vmem>>, vector<1x128xf32>
    %2 = vector.broadcast %1 : vector<1x128xf32> to vector<256x128xf32>
    %3 = arith.mulf %0, %2 : vector<256x128xf32>
    %c0_3 = arith.constant 0 : index
    %c0_4 = arith.constant 0 : index
    %4 = vector.load %arg3[%c0_3, %c0_4] : memref<1x128xf32, #tpu.memory_space<vmem>>, vector<1x128xf32>
    %5 = vector.broadcast %4 : vector<1x128xf32> to vector<256x128xf32>
    %6 = arith.addf %3, %5 : vector<256x128xf32>
    %cst = arith.constant 0.000000e+00 : f32
    %7 = vector.broadcast %cst : f32 to vector<256x128xf32>
    %8 = arith.maximumf %6, %7 : vector<256x128xf32>
    %c0_5 = arith.constant 0 : index
    %c0_6 = arith.constant 0 : index
    %9 = vector.load %arg4[%c0_5, %c0_6] : memref<256x128xf32, #tpu.memory_space<vmem>>, vector<256x128xf32>
    tpu.vector_store %arg4[%c0_5, %c0_6], %8 {strides = array<i32>} : memref<256x128xf32, #tpu.memory_space<vmem>>, vector<256x128xf32>,
    return
  }
  func.func @transform_0(%arg0: i32) -> (i32, i32) {
    %c0_i32 = arith.constant 0 : i32
    %c0_i32_0 = arith.constant 0 : i32
    return %arg0, %c0_i32 : i32, i32
  }
  func.func @transform_1(%arg0: i32) -> (i32, i32) {
    %c0_i32 = arith.constant 0 : i32
    %c0_i32_0 = arith.constant 0 : i32
    %c0_i32_1 = arith.constant 0 : i32
    return %c0_i32, %c0_i32_0 : i32, i32
  }
  func.func @transform_2(%arg0: i32) -> (i32, i32) {
    %c0_i32 = arith.constant 0 : i32
    %c0_i32_0 = arith.constant 0 : i32
    %c0_i32_1 = arith.constant 0 : i32
    return %c0_i32, %c0_i32_0 : i32, i32
  }
  func.func @transform_3(%arg0: i32) -> (i32, i32) {
    %c0_i32 = arith.constant 0 : i32
    %c0_i32_0 = arith.constant 0 : i32
    return %arg0, %c0_i32 : i32, i32
  }
}

module attributes {stable_mosaic.version = 11 : i64} {
  func.func @_max4_kernel(%arg0: i32, %arg1: memref<128x8xf32, #tpu.memory_space<vmem>>, %arg2: memref<128x8xf32, #tpu.memory_space<vmem>>, %arg3: memref<128x8xf32, #tpu.memory_space<vmem>>, %arg4: memref<128x8xf32, #tpu.memory_space<vmem>>, %arg5: memref<128x8xf32, #tpu.memory_space<vmem>>) attributes {dimension_semantics = [#tpu.dimension_semantics<parallel>], iteration_bounds = array<i64: 1>, scalar_prefetch = 0 : i64, scratch_operands = 0 : i64, tpu.core_type = #tpu.core_type<tc>, window_params = [{transform_indices = @transform_0, window_bounds = array<i64: 128, 8>}, {transform_indices = @transform_1, window_bounds = array<i64: 128, 8>}, {transform_indices = @transform_2, window_bounds = array<i64: 128, 8>}, {transform_indices = @transform_3, window_bounds = array<i64: 128, 8>}, {transform_indices = @transform_4, window_bounds = array<i64: 128, 8>}]} {
    %c0 = arith.constant 0 : index
    %c0_0 = arith.constant 0 : index
    %0 = vector.load %arg1[%c0, %c0_0] : memref<128x8xf32, #tpu.memory_space<vmem>>, vector<128x8xf32>
    %c0_1 = arith.constant 0 : index
    %c0_2 = arith.constant 0 : index
    %1 = vector.load %arg2[%c0_1, %c0_2] : memref<128x8xf32, #tpu.memory_space<vmem>>, vector<128x8xf32>
    %2 = arith.maximumf %0, %1 : vector<128x8xf32>
    %c0_3 = arith.constant 0 : index
    %c0_4 = arith.constant 0 : index
    %3 = vector.load %arg3[%c0_3, %c0_4] : memref<128x8xf32, #tpu.memory_space<vmem>>, vector<128x8xf32>
    %c0_5 = arith.constant 0 : index
    %c0_6 = arith.constant 0 : index
    %4 = vector.load %arg4[%c0_5, %c0_6] : memref<128x8xf32, #tpu.memory_space<vmem>>, vector<128x8xf32>
    %5 = arith.maximumf %3, %4 : vector<128x8xf32>
    %6 = arith.maximumf %2, %5 : vector<128x8xf32>
    %c0_7 = arith.constant 0 : index
    %c0_8 = arith.constant 0 : index
    %7 = vector.load %arg5[%c0_7, %c0_8] : memref<128x8xf32, #tpu.memory_space<vmem>>, vector<128x8xf32>
    tpu.vector_store %arg5[%c0_7, %c0_8], %6 {strides = array<i32>} : memref<128x8xf32, #tpu.memory_space<vmem>>, vector<128x8xf32>,
    return
  }
  func.func @transform_0(%arg0: i32) -> (i32, i32) {
    %c0_i32 = arith.constant 0 : i32
    %c0_i32_0 = arith.constant 0 : i32
    return %arg0, %c0_i32 : i32, i32
  }
  func.func @transform_1(%arg0: i32) -> (i32, i32) {
    %c0_i32 = arith.constant 0 : i32
    %c0_i32_0 = arith.constant 0 : i32
    return %arg0, %c0_i32 : i32, i32
  }
  func.func @transform_2(%arg0: i32) -> (i32, i32) {
    %c0_i32 = arith.constant 0 : i32
    %c0_i32_0 = arith.constant 0 : i32
    return %arg0, %c0_i32 : i32, i32
  }
  func.func @transform_3(%arg0: i32) -> (i32, i32) {
    %c0_i32 = arith.constant 0 : i32
    %c0_i32_0 = arith.constant 0 : i32
    return %arg0, %c0_i32 : i32, i32
  }
  func.func @transform_4(%arg0: i32) -> (i32, i32) {
    %c0_i32 = arith.constant 0 : i32
    %c0_i32_0 = arith.constant 0 : i32
    return %arg0, %c0_i32 : i32, i32
  }
}

module attributes {stable_mosaic.version = 11 : i64} {
  func.func @_bn_relu_kernel(%arg0: i32, %arg1: memref<128x128xf32, #tpu.memory_space<vmem>>, %arg2: memref<1x128xf32, #tpu.memory_space<vmem>>, %arg3: memref<1x128xf32, #tpu.memory_space<vmem>>, %arg4: memref<128x128xf32, #tpu.memory_space<vmem>>) attributes {dimension_semantics = [#tpu.dimension_semantics<parallel>], iteration_bounds = array<i64: 1>, scalar_prefetch = 0 : i64, scratch_operands = 0 : i64, tpu.core_type = #tpu.core_type<tc>, window_params = [{transform_indices = @transform_0, window_bounds = array<i64: 128, 128>}, {pipeline_mode = #tpu.pipeline_mode<synchronous>, transform_indices = @transform_1, window_bounds = array<i64: 1, 128>}, {pipeline_mode = #tpu.pipeline_mode<synchronous>, transform_indices = @transform_2, window_bounds = array<i64: 1, 128>}, {transform_indices = @transform_3, window_bounds = array<i64: 128, 128>}]} {
    %c0 = arith.constant 0 : index
    %c0_0 = arith.constant 0 : index
    %0 = vector.load %arg1[%c0, %c0_0] : memref<128x128xf32, #tpu.memory_space<vmem>>, vector<128x128xf32>
    %c0_1 = arith.constant 0 : index
    %c0_2 = arith.constant 0 : index
    %1 = vector.load %arg2[%c0_1, %c0_2] : memref<1x128xf32, #tpu.memory_space<vmem>>, vector<1x128xf32>
    %2 = vector.broadcast %1 : vector<1x128xf32> to vector<128x128xf32>
    %3 = arith.mulf %0, %2 : vector<128x128xf32>
    %c0_3 = arith.constant 0 : index
    %c0_4 = arith.constant 0 : index
    %4 = vector.load %arg3[%c0_3, %c0_4] : memref<1x128xf32, #tpu.memory_space<vmem>>, vector<1x128xf32>
    %5 = vector.broadcast %4 : vector<1x128xf32> to vector<128x128xf32>
    %6 = arith.addf %3, %5 : vector<128x128xf32>
    %cst = arith.constant 0.000000e+00 : f32
    %7 = vector.broadcast %cst : f32 to vector<128x128xf32>
    %8 = arith.maximumf %6, %7 : vector<128x128xf32>
    %c0_5 = arith.constant 0 : index
    %c0_6 = arith.constant 0 : index
    %9 = vector.load %arg4[%c0_5, %c0_6] : memref<128x128xf32, #tpu.memory_space<vmem>>, vector<128x128xf32>
    tpu.vector_store %arg4[%c0_5, %c0_6], %8 {strides = array<i32>} : memref<128x128xf32, #tpu.memory_space<vmem>>, vector<128x128xf32>,
    return
  }
  func.func @transform_0(%arg0: i32) -> (i32, i32) {
    %c0_i32 = arith.constant 0 : i32
    %c0_i32_0 = arith.constant 0 : i32
    return %arg0, %c0_i32 : i32, i32
  }
  func.func @transform_1(%arg0: i32) -> (i32, i32) {
    %c0_i32 = arith.constant 0 : i32
    %c0_i32_0 = arith.constant 0 : i32
    %c0_i32_1 = arith.constant 0 : i32
    return %c0_i32, %c0_i32_0 : i32, i32
  }
  func.func @transform_2(%arg0: i32) -> (i32, i32) {
    %c0_i32 = arith.constant 0 : i32
    %c0_i32_0 = arith.constant 0 : i32
    %c0_i32_1 = arith.constant 0 : i32
    return %c0_i32, %c0_i32_0 : i32, i32
  }
  func.func @transform_3(%arg0: i32) -> (i32, i32) {
    %c0_i32 = arith.constant 0 : i32
    %c0_i32_0 = arith.constant 0 : i32
    return %arg0, %c0_i32 : i32, i32
  }
}

module attributes {stable_mosaic.version = 11 : i64} {
  func.func @_conv_matmul_stats_kernel(%arg0: i32, %arg1: memref<128x128xf32, #tpu.memory_space<vmem>>, %arg2: memref<128x128xf32, #tpu.memory_space<vmem>>, %arg3: memref<128x128xf32, #tpu.memory_space<vmem>>, %arg4: memref<1x1x128xf32, #tpu.memory_space<vmem>>, %arg5: memref<1x1x128xf32, #tpu.memory_space<vmem>>) attributes {dimension_semantics = [#tpu.dimension_semantics<parallel>], iteration_bounds = array<i64: 1>, scalar_prefetch = 0 : i64, scratch_operands = 0 : i64, tpu.core_type = #tpu.core_type<tc>, window_params = [{transform_indices = @transform_0, window_bounds = array<i64: 128, 128>}, {pipeline_mode = #tpu.pipeline_mode<synchronous>, transform_indices = @transform_1, window_bounds = array<i64: 128, 128>}, {transform_indices = @transform_2, window_bounds = array<i64: 128, 128>}, {transform_indices = @transform_3, window_bounds = array<i64: 1, 1, 128>}, {transform_indices = @transform_4, window_bounds = array<i64: 1, 1, 128>}]} {
    %c0 = arith.constant 0 : index
    %c0_0 = arith.constant 0 : index
    %0 = vector.load %arg1[%c0, %c0_0] : memref<128x128xf32, #tpu.memory_space<vmem>>, vector<128x128xf32>
    %c0_1 = arith.constant 0 : index
    %c0_2 = arith.constant 0 : index
    %1 = vector.load %arg2[%c0_1, %c0_2] : memref<128x128xf32, #tpu.memory_space<vmem>>, vector<128x128xf32>
    %cst = arith.constant dense<0.000000e+00> : vector<128x128xf32>
    %2 = tpu.matmul %0, %1, %cst {dimension_numbers = #tpu.dot_dimension_numbers<[1], [0], [0], [1], [0, 0, 1, 1], [], []>} : vector<128x128xf32>, vector<128x128xf32>, vector<128x128xf32> -> vector<128x128xf32>
    %c0_3 = arith.constant 0 : index
    %c0_4 = arith.constant 0 : index
    %3 = vector.load %arg3[%c0_3, %c0_4] : memref<128x128xf32, #tpu.memory_space<vmem>>, vector<128x128xf32>
    tpu.vector_store %arg3[%c0_3, %c0_4], %2 {strides = array<i32>} : memref<128x128xf32, #tpu.memory_space<vmem>>, vector<128x128xf32>,
    %cst_5 = arith.constant dense<0.000000e+00> : vector<128xf32>
    %4 = vector.multi_reduction <add>, %2, %cst_5 [0] : vector<128x128xf32> to vector<128xf32>
    %5 = vector.shape_cast %4 : vector<128xf32> to vector<1x128xf32>
    %6 = vector.shape_cast %5 : vector<1x128xf32> to vector<1x1x128xf32>
    %c0_6 = arith.constant 0 : index
    %c0_7 = arith.constant 0 : index
    %c0_8 = arith.constant 0 : index
    %7 = vector.load %arg4[%c0_6, %c0_7, %c0_8] : memref<1x1x128xf32, #tpu.memory_space<vmem>>, vector<1x1x128xf32>
    tpu.vector_store %arg4[%c0_6, %c0_7, %c0_8], %6 {strides = array<i32>} : memref<1x1x128xf32, #tpu.memory_space<vmem>>, vector<1x1x128xf32>,
    %8 = arith.mulf %2, %2 : vector<128x128xf32>
    %cst_9 = arith.constant dense<0.000000e+00> : vector<128xf32>
    %9 = vector.multi_reduction <add>, %8, %cst_9 [0] : vector<128x128xf32> to vector<128xf32>
    %10 = vector.shape_cast %9 : vector<128xf32> to vector<1x128xf32>
    %11 = vector.shape_cast %10 : vector<1x128xf32> to vector<1x1x128xf32>
    %c0_10 = arith.constant 0 : index
    %c0_11 = arith.constant 0 : index
    %c0_12 = arith.constant 0 : index
    %12 = vector.load %arg5[%c0_10, %c0_11, %c0_12] : memref<1x1x128xf32, #tpu.memory_space<vmem>>, vector<1x1x128xf32>
    tpu.vector_store %arg5[%c0_10, %c0_11, %c0_12], %11 {strides = array<i32>} : memref<1x1x128xf32, #tpu.memory_space<vmem>>, vector<1x1x128xf32>,
    return
  }
  func.func @transform_0(%arg0: i32) -> (i32, i32) {
    %c0_i32 = arith.constant 0 : i32
    %c0_i32_0 = arith.constant 0 : i32
    return %arg0, %c0_i32 : i32, i32
  }
  func.func @transform_1(%arg0: i32) -> (i32, i32) {
    %c0_i32 = arith.constant 0 : i32
    %c0_i32_0 = arith.constant 0 : i32
    %c0_i32_1 = arith.constant 0 : i32
    return %c0_i32, %c0_i32_0 : i32, i32
  }
  func.func @transform_2(%arg0: i32) -> (i32, i32) {
    %c0_i32 = arith.constant 0 : i32
    %c0_i32_0 = arith.constant 0 : i32
    return %arg0, %c0_i32 : i32, i32
  }
  func.func @transform_3(%arg0: i32) -> (i32, i32, i32) {
    %c0_i32 = arith.constant 0 : i32
    %c0_i32_0 = arith.constant 0 : i32
    %c0_i32_1 = arith.constant 0 : i32
    return %arg0, %c0_i32, %c0_i32_0 : i32, i32, i32
  }
  func.func @transform_4(%arg0: i32) -> (i32, i32, i32) {
    %c0_i32 = arith.constant 0 : i32
    %c0_i32_0 = arith.constant 0 : i32
    %c0_i32_1 = arith.constant 0 : i32
    return %arg0, %c0_i32, %c0_i32_0 : i32, i32, i32
  }
}

module attributes {stable_mosaic.version = 11 : i64} {
  func.func @_conv_matmul_stats_kernel(%arg0: i32, %arg1: memref<128x256xf32, #tpu.memory_space<vmem>>, %arg2: memref<256x128xf32, #tpu.memory_space<vmem>>, %arg3: memref<128x128xf32, #tpu.memory_space<vmem>>, %arg4: memref<1x1x128xf32, #tpu.memory_space<vmem>>, %arg5: memref<1x1x128xf32, #tpu.memory_space<vmem>>) attributes {dimension_semantics = [#tpu.dimension_semantics<parallel>], iteration_bounds = array<i64: 1>, scalar_prefetch = 0 : i64, scratch_operands = 0 : i64, tpu.core_type = #tpu.core_type<tc>, window_params = [{transform_indices = @transform_0, window_bounds = array<i64: 128, 256>}, {pipeline_mode = #tpu.pipeline_mode<synchronous>, transform_indices = @transform_1, window_bounds = array<i64: 256, 128>}, {transform_indices = @transform_2, window_bounds = array<i64: 128, 128>}, {transform_indices = @transform_3, window_bounds = array<i64: 1, 1, 128>}, {transform_indices = @transform_4, window_bounds = array<i64: 1, 1, 128>}]} {
    %c0 = arith.constant 0 : index
    %c0_0 = arith.constant 0 : index
    %0 = vector.load %arg1[%c0, %c0_0] : memref<128x256xf32, #tpu.memory_space<vmem>>, vector<128x256xf32>
    %c0_1 = arith.constant 0 : index
    %c0_2 = arith.constant 0 : index
    %1 = vector.load %arg2[%c0_1, %c0_2] : memref<256x128xf32, #tpu.memory_space<vmem>>, vector<256x128xf32>
    %cst = arith.constant dense<0.000000e+00> : vector<128x128xf32>
    %2 = tpu.matmul %0, %1, %cst {dimension_numbers = #tpu.dot_dimension_numbers<[1], [0], [0], [1], [0, 0, 1, 1], [], []>} : vector<128x256xf32>, vector<256x128xf32>, vector<128x128xf32> -> vector<128x128xf32>
    %c0_3 = arith.constant 0 : index
    %c0_4 = arith.constant 0 : index
    %3 = vector.load %arg3[%c0_3, %c0_4] : memref<128x128xf32, #tpu.memory_space<vmem>>, vector<128x128xf32>
    tpu.vector_store %arg3[%c0_3, %c0_4], %2 {strides = array<i32>} : memref<128x128xf32, #tpu.memory_space<vmem>>, vector<128x128xf32>,
    %cst_5 = arith.constant dense<0.000000e+00> : vector<128xf32>
    %4 = vector.multi_reduction <add>, %2, %cst_5 [0] : vector<128x128xf32> to vector<128xf32>
    %5 = vector.shape_cast %4 : vector<128xf32> to vector<1x128xf32>
    %6 = vector.shape_cast %5 : vector<1x128xf32> to vector<1x1x128xf32>
    %c0_6 = arith.constant 0 : index
    %c0_7 = arith.constant 0 : index
    %c0_8 = arith.constant 0 : index
    %7 = vector.load %arg4[%c0_6, %c0_7, %c0_8] : memref<1x1x128xf32, #tpu.memory_space<vmem>>, vector<1x1x128xf32>
    tpu.vector_store %arg4[%c0_6, %c0_7, %c0_8], %6 {strides = array<i32>} : memref<1x1x128xf32, #tpu.memory_space<vmem>>, vector<1x1x128xf32>,
    %8 = arith.mulf %2, %2 : vector<128x128xf32>
    %cst_9 = arith.constant dense<0.000000e+00> : vector<128xf32>
    %9 = vector.multi_reduction <add>, %8, %cst_9 [0] : vector<128x128xf32> to vector<128xf32>
    %10 = vector.shape_cast %9 : vector<128xf32> to vector<1x128xf32>
    %11 = vector.shape_cast %10 : vector<1x128xf32> to vector<1x1x128xf32>
    %c0_10 = arith.constant 0 : index
    %c0_11 = arith.constant 0 : index
    %c0_12 = arith.constant 0 : index
    %12 = vector.load %arg5[%c0_10, %c0_11, %c0_12] : memref<1x1x128xf32, #tpu.memory_space<vmem>>, vector<1x1x128xf32>
    tpu.vector_store %arg5[%c0_10, %c0_11, %c0_12], %11 {strides = array<i32>} : memref<1x1x128xf32, #tpu.memory_space<vmem>>, vector<1x1x128xf32>,
    return
  }
  func.func @transform_0(%arg0: i32) -> (i32, i32) {
    %c0_i32 = arith.constant 0 : i32
    %c0_i32_0 = arith.constant 0 : i32
    return %arg0, %c0_i32 : i32, i32
  }
  func.func @transform_1(%arg0: i32) -> (i32, i32) {
    %c0_i32 = arith.constant 0 : i32
    %c0_i32_0 = arith.constant 0 : i32
    %c0_i32_1 = arith.constant 0 : i32
    return %c0_i32, %c0_i32_0 : i32, i32
  }
  func.func @transform_2(%arg0: i32) -> (i32, i32) {
    %c0_i32 = arith.constant 0 : i32
    %c0_i32_0 = arith.constant 0 : i32
    return %arg0, %c0_i32 : i32, i32
  }
  func.func @transform_3(%arg0: i32) -> (i32, i32, i32) {
    %c0_i32 = arith.constant 0 : i32
    %c0_i32_0 = arith.constant 0 : i32
    %c0_i32_1 = arith.constant 0 : i32
    return %arg0, %c0_i32, %c0_i32_0 : i32, i32, i32
  }
  func.func @transform_4(%arg0: i32) -> (i32, i32, i32) {
    %c0_i32 = arith.constant 0 : i32
    %c0_i32_0 = arith.constant 0 : i32
    %c0_i32_1 = arith.constant 0 : i32
    return %arg0, %c0_i32, %c0_i32_0 : i32, i32, i32
  }
}

module attributes {stable_mosaic.version = 11 : i64} {
  func.func @_max4_kernel(%arg0: i32, %arg1: memref<32x16xf32, #tpu.memory_space<vmem>>, %arg2: memref<32x16xf32, #tpu.memory_space<vmem>>, %arg3: memref<32x16xf32, #tpu.memory_space<vmem>>, %arg4: memref<32x16xf32, #tpu.memory_space<vmem>>, %arg5: memref<32x16xf32, #tpu.memory_space<vmem>>) attributes {dimension_semantics = [#tpu.dimension_semantics<parallel>], iteration_bounds = array<i64: 1>, scalar_prefetch = 0 : i64, scratch_operands = 0 : i64, tpu.core_type = #tpu.core_type<tc>, window_params = [{transform_indices = @transform_0, window_bounds = array<i64: 32, 16>}, {transform_indices = @transform_1, window_bounds = array<i64: 32, 16>}, {transform_indices = @transform_2, window_bounds = array<i64: 32, 16>}, {transform_indices = @transform_3, window_bounds = array<i64: 32, 16>}, {transform_indices = @transform_4, window_bounds = array<i64: 32, 16>}]} {
    %c0 = arith.constant 0 : index
    %c0_0 = arith.constant 0 : index
    %0 = vector.load %arg1[%c0, %c0_0] : memref<32x16xf32, #tpu.memory_space<vmem>>, vector<32x16xf32>
    %c0_1 = arith.constant 0 : index
    %c0_2 = arith.constant 0 : index
    %1 = vector.load %arg2[%c0_1, %c0_2] : memref<32x16xf32, #tpu.memory_space<vmem>>, vector<32x16xf32>
    %2 = arith.maximumf %0, %1 : vector<32x16xf32>
    %c0_3 = arith.constant 0 : index
    %c0_4 = arith.constant 0 : index
    %3 = vector.load %arg3[%c0_3, %c0_4] : memref<32x16xf32, #tpu.memory_space<vmem>>, vector<32x16xf32>
    %c0_5 = arith.constant 0 : index
    %c0_6 = arith.constant 0 : index
    %4 = vector.load %arg4[%c0_5, %c0_6] : memref<32x16xf32, #tpu.memory_space<vmem>>, vector<32x16xf32>
    %5 = arith.maximumf %3, %4 : vector<32x16xf32>
    %6 = arith.maximumf %2, %5 : vector<32x16xf32>
    %c0_7 = arith.constant 0 : index
    %c0_8 = arith.constant 0 : index
    %7 = vector.load %arg5[%c0_7, %c0_8] : memref<32x16xf32, #tpu.memory_space<vmem>>, vector<32x16xf32>
    tpu.vector_store %arg5[%c0_7, %c0_8], %6 {strides = array<i32>} : memref<32x16xf32, #tpu.memory_space<vmem>>, vector<32x16xf32>,
    return
  }
  func.func @transform_0(%arg0: i32) -> (i32, i32) {
    %c0_i32 = arith.constant 0 : i32
    %c0_i32_0 = arith.constant 0 : i32
    return %arg0, %c0_i32 : i32, i32
  }
  func.func @transform_1(%arg0: i32) -> (i32, i32) {
    %c0_i32 = arith.constant 0 : i32
    %c0_i32_0 = arith.constant 0 : i32
    return %arg0, %c0_i32 : i32, i32
  }
  func.func @transform_2(%arg0: i32) -> (i32, i32) {
    %c0_i32 = arith.constant 0 : i32
    %c0_i32_0 = arith.constant 0 : i32
    return %arg0, %c0_i32 : i32, i32
  }
  func.func @transform_3(%arg0: i32) -> (i32, i32) {
    %c0_i32 = arith.constant 0 : i32
    %c0_i32_0 = arith.constant 0 : i32
    return %arg0, %c0_i32 : i32, i32
  }
  func.func @transform_4(%arg0: i32) -> (i32, i32) {
    %c0_i32 = arith.constant 0 : i32
    %c0_i32_0 = arith.constant 0 : i32
    return %arg0, %c0_i32 : i32, i32
  }
}

</mosaic_0001>

<bundles_post_ra>
// kernel: aunet_encoder_forward.11
= control target key start
LH: loop header
LB: loop body
LE: loop exit
PB: predicated region body
PF: predicated region fallthrough
CT: control target
= control target key end

     0   :  { %s453_s12 = smov 0   ;;  %s643_s0 = inlined_call_operand.vmem [shape: f32[512,128], index: 0, kind: input, shape index: {}, may-alias: {0,3}]   ;;  %s644_s1 = inlined_call_operand.vmem [shape: f32[1,128], index: 1, kind: input, shape index: {}]   ;;  %s645_s2 = inlined_call_operand.vmem [shape: f32[1,128], index: 2, kind: input, shape index: {}]   ;;  %s646_s3 = inlined_call_operand.vmem [shape: f32[512,128], index: 3, kind: output, shape index: {}, may-alias: {0,3}]  }
   0x1 LB: > { %s404_s13 = sadd.s32 4294967295, %s431_s12   ;;  %p408_p0 = scmp.ge.s32.totalorder %s431_s12, 1  ;;  %s431_s12 = sphi %s453_s12, %s13_s12  }
   0x2   : > { %p138_p1 = scmp.lt.s32.totalorder %s431_s12, 3 }
   0x4   : > { %p139_p2 = pnand %p408_p0, %p138_p1 }
   0x5   : > { %s409_s14 = sshll.u32 (!%p139_p2), %s404_s13, 5  ;;  %v467_v0 = vld [vmem:[%s644_s1] ss:$0 sm:$0xff] (!%p139_p2) }
   0x6   : > { %142 = sbr.rel (%p139_p2) target bundleno = 46 (0x2e), region = 32  ;;  %p163_p3 = scmp.lt.s32.totalorder (!%p139_p2), %s409_s14, 63  ;;  %v479_v1 = vld [vmem:[%s645_s2] ss:$0 sm:$0xff] (!%p139_p2) }
   0xd   : > { %s648_s14 = smov (!%p163_p3, %s409_s14), 63 }
   0xe   : > { %s410_s15 = sshll.u32 %s648_s14, 3 }
   0xf   : > { %s474_s20 = scalar_lea.vmem %s643_s0, %s410_s15  ;;  %s521_s25 = scalar_lea.vmem %s646_s3, %s410_s15 }
  0x10   : > { %v174_v2 = vld [vmem:[%s474_s20] sm:$0xff]  ;;  %v175_v3 = vld [vmem:[%s474_s20 + $0x8] sm:$0xff]  ;;  %v176_v4 = vld [vmem:[%s474_s20 + $0x10] sm:$0xff] }
  0x11   : > { %v177_v5 = vld [vmem:[%s474_s20 + $0x18] sm:$0xff]  ;;  %v178_v6 = vld [vmem:[%s474_s20 + $0x20] sm:$0xff]  ;;  %v179_v7 = vld [vmem:[%s474_s20 + $0x28] sm:$0xff]  ;;  %v213_v8 = vmul.f32 %v467_v0, %v174_v2  ;;  %v214_v9 = vmul.f32 %v467_v0, %v175_v3  ;;  %v215_v10 = vmul.f32 %v467_v0, %v176_v4 }
  0x12   : > { %v180_v11 = vld [vmem:[%s474_s20 + $0x30] sm:$0xff]  ;;  %v181_v12 = vld [vmem:[%s474_s20 + $0x38] sm:$0xff]  ;;  %v216_v13 = vmul.f32 %v467_v0, %v177_v5  ;;  %v217_v14 = vmul.f32 %v467_v0, %v178_v6  ;;  %v218_v15 = vmul.f32 %v467_v0, %v179_v7  ;;  %v182_v20 = vld [vmem:[%s474_s20 + $0x40] sm:$0xff] }
  0x13   : > { %v252_v16 = vadd.f32 %v479_v1, %v213_v8  ;;  %v253_v17 = vadd.f32 %v479_v1, %v214_v9  ;;  %v254_v18 = vadd.f32 %v479_v1, %v215_v10  ;;  %v219_v19 = vmul.f32 %v467_v0, %v180_v11  ;;  %v183_v21 = vld [vmem:[%s474_s20 + $0x48] sm:$0xff]  ;;  %v184_v22 = vld [vmem:[%s474_s20 + $0x50] sm:$0xff]  ;;  %v185_v27 = vld [vmem:[%s474_s20 + $0x58] sm:$0xff] }
  0x14   : > { %v255_v23 = vadd.f32 %v479_v1, %v216_v13  ;;  %v256_v24 = vadd.f32 %v479_v1, %v217_v14  ;;  %v257_v25 = vadd.f32 %v479_v1, %v218_v15  ;;  %v220_v26 = vmul.f32 %v467_v0, %v181_v12  ;;  %v186_v28 = vld [vmem:[%s474_s20 + $0x60] sm:$0xff]  ;;  %v187_v29 = vld [vmem:[%s474_s20 + $0x68] sm:$0xff]  ;;  %v188_v34 = vld [vmem:[%s474_s20 + $0x70] sm:$0xff] }
  0x15   : > { %v284_v30 = vmax.f32 %v252_v16, 0.0  ;;  %v285_v31 = vmax.f32 %v253_v17, 0.0  ;;  %v286_v32 = vmax.f32 %v254_v18, 0.0  ;;  %v258_v33 = vadd.f32 %v479_v1, %v219_v19  ;;  %v189_v39 = vld [vmem:[%s474_s20 + $0x78] sm:$0xff]  ;;  %v190_v44 = vld [vmem:[%s474_s20 + $0x80] sm:$0xff]  ;;  %v191_v45 = vld [vmem:[%s474_s20 + $0x88] sm:$0xff] }
  0x16   : > { %v287_v35 = vmax.f32 %v255_v23, 0.0  ;;  %v288_v36 = vmax.f32 %v256_v24, 0.0  ;;  %v289_v37 = vmax.f32 %v257_v25, 0.0  ;;  %v259_v38 = vadd.f32 %v479_v1, %v220_v26  ;;  %v192_v46 = vld [vmem:[%s474_s20 + $0x90] sm:$0xff]  ;;  %v193_v47 = vld [vmem:[%s474_s20 + $0x98] sm:$0xff]  ;;  %v194_v48 = vld [vmem:[%s474_s20 + $0xa0] sm:$0xff] }
  0x17   : > { %v290_v40 = vmax.f32 %v258_v33, 0.0  ;;  %v221_v41 = vmul.f32 %v467_v0, %v182_v20  ;;  %v222_v42 = vmul.f32 %v467_v0, %v183_v21  ;;  %v223_v43 = vmul.f32 %v467_v0, %v184_v22  ;;  %v195_v49 = vld [vmem:[%s474_s20 + $0xa8] sm:$0xff]  ;;  %v196_v50 = vld [vmem:[%s474_s20 + $0xb0] sm:$0xff]  ;;  %v197_v51 = vld [vmem:[%s474_s20 + $0xb8] sm:$0xff] }
  0x18   : > { %v532_v52 = vld [vmem:[%s474_s20 + $0xc0] sm:$0xff]  ;;  %v535_v53 = vld [vmem:[%s474_s20 + $0xc8] sm:$0xff]  ;;  %v291_v54 = vmax.f32 %v259_v38, 0.0  ;;  %v224_v55 = vmul.f32 %v467_v0, %v185_v27  ;;  %v225_v56 = vmul.f32 %v467_v0, %v186_v28  ;;  %v226_v57 = vmul.f32 %v467_v0, %v187_v29  ;;  %v541_v58 = vld [vmem:[%s474_s20 + $0xd0] sm:$0xff] }
  0x19   : > { %v544_v59 = vld [vmem:[%s474_s20 + $0xd8] sm:$0xff]  ;;  %v547_v60 = vld [vmem:[%s474_s20 + $0xe0] sm:$0xff]  ;;  %v260_v61 = vadd.f32 %v479_v1, %v221_v41  ;;  %v261_v62 = vadd.f32 %v479_v1, %v222_v42  ;;  %v262_v63 = vadd.f32 %v479_v1, %v223_v43  ;;  %v227_v2 = vmul.f32 %v467_v0, %v188_v34  ;;  %v554_v3 = vld [vmem:[%s474_s20 + $0xe8] sm:$0xff] }
  0x1a   : > { %v557_v4 = vld [vmem:[%s474_s20 + $0xf0] sm:$0xff]  ;;  %v560_v5 = vld [vmem:[%s474_s20 + $0xf8] sm:$0xff]  ;;  %v263_v6 = vadd.f32 %v479_v1, %v224_v55  ;;  %v264_v7 = vadd.f32 %v479_v1, %v225_v56  ;;  %v265_v8 = vadd.f32 %v479_v1, %v226_v57  ;;  %v228_v9 = vmul.f32 %v467_v0, %v189_v39 }
  0x1b   : > { %316 = vst [vmem:[%s521_s25] sm:$0xff] %v284_v30  ;;  %317 = vst [vmem:[%s521_s25 + $0x8] sm:$0xff] %v285_v31  ;;  %v292_v10 = vmax.f32 %v260_v61, 0.0  ;;  %v293_v11 = vmax.f32 %v261_v62, 0.0  ;;  %v294_v12 = vmax.f32 %v262_v63, 0.0  ;;  %v266_v13 = vadd.f32 %v479_v1, %v227_v2 }
  0x1c   : > { %318 = vst [vmem:[%s521_s25 + $0x10] sm:$0xff] %v286_v32  ;;  %319 = vst [vmem:[%s521_s25 + $0x18] sm:$0xff] %v287_v35  ;;  %v295_v14 = vmax.f32 %v263_v6, 0.0  ;;  %v296_v15 = vmax.f32 %v264_v7, 0.0  ;;  %v297_v16 = vmax.f32 %v265_v8, 0.0  ;;  %v267_v17 = vadd.f32 %v479_v1, %v228_v9 }
  0x1d   : > { %320 = vst [vmem:[%s521_s25 + $0x20] sm:$0xff] %v288_v36  ;;  %321 = vst [vmem:[%s521_s25 + $0x28] sm:$0xff] %v289_v37  ;;  %v298_v18 = vmax.f32 %v266_v13, 0.0  ;;  %v229_v19 = vmul.f32 %v467_v0, %v190_v44  ;;  %v230_v20 = vmul.f32 %v467_v0, %v191_v45  ;;  %v231_v21 = vmul.f32 %v467_v0, %v192_v46 }
  0x1e   : > { %322 = vst [vmem:[%s521_s25 + $0x30] sm:$0xff] %v290_v40  ;;  %323 = vst [vmem:[%s521_s25 + $0x38] sm:$0xff] %v291_v54  ;;  %v299_v22 = vmax.f32 %v267_v17, 0.0  ;;  %v232_v23 = vmul.f32 %v467_v0, %v193_v47  ;;  %v233_v24 = vmul.f32 %v467_v0, %v194_v48  ;;  %v234_v25 = vmul.f32 %v467_v0, %v195_v49 }
  0x1f   : > { %324 = vst [vmem:[%s521_s25 + $0x40] sm:$0xff] %v292_v10  ;;  %325 = vst [vmem:[%s521_s25 + $0x48] sm:$0xff] %v293_v11  ;;  %v268_v26 = vadd.f32 %v479_v1, %v229_v19  ;;  %v269_v27 = vadd.f32 %v479_v1, %v230_v20  ;;  %v270_v28 = vadd.f32 %v479_v1, %v231_v21 }
  0x20   : > { %326 = vst [vmem:[%s521_s25 + $0x50] sm:$0xff] %v294_v12  ;;  %327 = vst [vmem:[%s521_s25 + $0x58] sm:$0xff] %v295_v14  ;;  %v235_v29 = vmul.f32 %v467_v0, %v196_v50  ;;  %v271_v30 = vadd.f32 %v479_v1, %v232_v23  ;;  %v272_v31 = vadd.f32 %v479_v1, %v233_v24 }
  0x21   : > { %328 = vst [vmem:[%s521_s25 + $0x60] sm:$0xff] %v296_v15  ;;  %329 = vst [vmem:[%s521_s25 + $0x68] sm:$0xff] %v297_v16  ;;  %v273_v32 = vadd.f32 %v479_v1, %v234_v25  ;;  %v236_v33 = vmul.f32 %v467_v0, %v197_v51  ;;  %v300_v34 = vmax.f32 %v268_v26, 0.0  ;;  %v301_v35 = vmax.f32 %v269_v27, 0.0 }
  0x22   : > { %330 = vst [vmem:[%s521_s25 + $0x70] sm:$0xff] %v298_v18  ;;  %331 = vst [vmem:[%s521_s25 + $0x78] sm:$0xff] %v299_v22  ;;  %v302_v36 = vmax.f32 %v270_v28, 0.0  ;;  %v274_v37 = vadd.f32 %v479_v1, %v235_v29  ;;  %v303_v38 = vmax.f32 %v271_v30, 0.0  ;;  %v304_v39 = vmax.f32 %v272_v31, 0.0 }
  0x23   : > { %v305_v40 = vmax.f32 %v273_v32, 0.0  ;;  %v275_v41 = vadd.f32 %v479_v1, %v236_v33  ;;  %332 = vst [vmem:[%s521_s25 + $0x80] sm:$0xff] %v300_v34  ;;  %333 = vst [vmem:[%s521_s25 + $0x88] sm:$0xff] %v301_v35  ;;  %v237_v43 = vmul.f32 %v467_v0, %v532_v52  ;;  %v238_v44 = vmul.f32 %v467_v0, %v535_v53 }
  0x24   : > { %334 = vst [vmem:[%s521_s25 + $0x90] sm:$0xff] %v302_v36  ;;  %v306_v42 = vmax.f32 %v274_v37, 0.0  ;;  %v239_v45 = vmul.f32 %v467_v0, %v541_v58  ;;  %335 = vst [vmem:[%s521_s25 + $0x98] sm:$0xff] %v303_v38  ;;  %v240_v47 = vmul.f32 %v467_v0, %v544_v59  ;;  %v241_v48 = vmul.f32 %v467_v0, %v547_v60 }
  0x25   : > { %336 = vst [vmem:[%s521_s25 + $0xa0] sm:$0xff] %v304_v39  ;;  %337 = vst [vmem:[%s521_s25 + $0xa8] sm:$0xff] %v305_v40  ;;  %v307_v46 = vmax.f32 %v275_v41, 0.0  ;;  %v242_v49 = vmul.f32 %v467_v0, %v554_v3  ;;  %v276_v50 = vadd.f32 %v479_v1, %v237_v43  ;;  %v277_v51 = vadd.f32 %v479_v1, %v238_v44 }
  0x26   : > { %338 = vst [vmem:[%s521_s25 + $0xb0] sm:$0xff] %v306_v42  ;;  %v278_v52 = vadd.f32 %v479_v1, %v239_v45  ;;  %v243_v53 = vmul.f32 %v467_v0, %v557_v4  ;;  %v279_v54 = vadd.f32 %v479_v1, %v240_v47  ;;  %v280_v55 = vadd.f32 %v479_v1, %v241_v48 }
  0x27   : > { %339 = vst [vmem:[%s521_s25 + $0xb8] sm:$0xff] %v307_v46  ;;  %v281_v56 = vadd.f32 %v479_v1, %v242_v49  ;;  %v244_v57 = vmul.f32 %v467_v0, %v560_v5  ;;  %v308_v58 = vmax.f32 %v276_v50, 0.0  ;;  %v309_v59 = vmax.f32 %v277_v51, 0.0 }
  0x28   : > { %v310_v60 = vmax.f32 %v278_v52, 0.0  ;;  %v282_v61 = vadd.f32 %v479_v1, %v243_v53  ;;  %v311_v62 = vmax.f32 %v279_v54, 0.0  ;;  %v312_v63 = vmax.f32 %v280_v55, 0.0 }
  0x29   : > { %v313_v2 = vmax.f32 %v281_v56, 0.0  ;;  %v283_v3 = vadd.f32 %v479_v1, %v244_v57  ;;  %340 = vst [vmem:[%s521_s25 + $0xc0] sm:$0xff] %v308_v58  ;;  %341 = vst [vmem:[%s521_s25 + $0xc8] sm:$0xff] %v309_v59 }
  0x2a   : > { %342 = vst [vmem:[%s521_s25 + $0xd0] sm:$0xff] %v310_v60  ;;  %v314_v4 = vmax.f32 %v282_v61, 0.0  ;;  %343 = vst [vmem:[%s521_s25 + $0xd8] sm:$0xff] %v311_v62 }
  0x2b   : > { %344 = vst [vmem:[%s521_s25 + $0xe0] sm:$0xff] %v312_v63  ;;  %345 = vst [vmem:[%s521_s25 + $0xe8] sm:$0xff] %v313_v2  ;;  %v315_v0 = vmax.f32 %v283_v3, 0.0 }
  0x2c   : > { %346 = vst [vmem:[%s521_s25 + $0xf0] sm:$0xff] %v314_v4 }
  0x2d   : > { %347 = vst [vmem:[%s521_s25 + $0xf8] sm:$0xff] %v315_v0 }
  0x2e PF: > { %s13_s12 = sadd.s32 1, %s431_s12  }
  0x2f   : > { %p10_p4 = scmp.ge.s32.totalorder %s13_s12, 4  }
  0x31   :  { %12 = sbr.rel (!%p10_p4) target bundleno = 1 (0x1), region = 62 }

// kernel: aunet_encoder_forward.10
= control target key start
LH: loop header
LB: loop body
LE: loop exit
PB: predicated region body
PF: predicated region fallthrough
CT: control target
= control target key end

     0   :  { %s965_s15 = smov 0   ;;  %s1194_s0 = inlined_call_operand.vmem [shape: f32[512,128], index: 0, kind: input, shape index: {}]   ;;  %s1195_s1 = inlined_call_operand.vmem [shape: f32[128,128], index: 1, kind: input, shape index: {}]   ;;  %s1196_s2 = inlined_call_operand.vmem [shape: f32[512,128], index: 2, kind: output, shape index: {0}]   ;;  %s1197_s3 = inlined_call_operand.vmem [shape: f32[2,1,128], index: 3, kind: output, shape index: {1}]   ;;  %s1198_s4 = inlined_call_operand.vmem [shape: f32[2,1,128], index: 4, kind: output, shape index: {2}]  }
   0x1 LB: > { %s971_s16 = sadd.s32 4294967295, %s938_s15   ;;  %p741_p0 = scmp.ge.s32.totalorder %s938_s15, 1  ;;  %s938_s15 = sphi %s965_s15, %s15_s15  }
   0x2   : > { %p168_p1 = scmp.lt.s32.totalorder %s938_s15, 3 }
   0x4   : > { %p169_p2 = pnand %p741_p0, %p168_p1 }
   0x5   : > { %v250_v0 = vld [vmem:[%s1195_s1] sm:$0xff] (!%p169_p2)  ;;  %v251_v1 = vld [vmem:[%s1195_s1 + $0x8] sm:$0xff] (!%p169_p2)  ;;  %v252_v2 = vld [vmem:[%s1195_s1 + $0x10] sm:$0xff] (!%p169_p2)  ;;  %s742_s23 = sshll.u32 (!%p169_p2), %s971_s16, 5  ;;  %p212_p4 = scmp.lt.s32.totalorder (!%p169_p2), %s971_s16, 1 }
   0x6   : > { %172 = sbr.rel (%p169_p2) target bundleno = 332 (0x14c), region = 28  ;;  %v876_v3 = vpack.c.bf16 (!%p169_p2), %v251_v1, %v250_v0  ;;  %v253_v4 = vld [vmem:[%s1195_s1 + $0x18] sm:$0xff] (!%p169_p2)  ;;  %p201_p3 = scmp.lt.s32.totalorder (!%p169_p2), %s742_s23, 63  ;;  %v254_v6 = vld [vmem:[%s1195_s1 + $0x20] sm:$0xff] (!%p169_p2)  ;;  %v255_v7 = vld [vmem:[%s1195_s1 + $0x28] sm:$0xff] (!%p169_p2) }
   0x7   : > { %v880_v5 = vpack.c.bf16 (!%p169_p2), %v253_v4, %v252_v2  ;;  %v884_v8 = vpack.c.bf16 (!%p169_p2), %v255_v7, %v254_v6  ;;  %v256_v9 = vld [vmem:[%s1195_s1 + $0x30] sm:$0xff] (!%p169_p2)  ;;  %v257_v10 = vld [vmem:[%s1195_s1 + $0x38] sm:$0xff] (!%p169_p2)  ;;  %v258_v13 = vld [vmem:[%s1195_s1 + $0x40] sm:$0xff] (!%p169_p2) }
   0x8   : > { %877 = vmatprep.subr.bf16.mxu0 (!%p169_p2), %v876_v3  ;;  %908 = vmatprep.subr.bf16.mxu1 (!%p169_p2), %v876_v3  ;;  %v888_v12 = vpack.c.bf16 (!%p169_p2), %v257_v10, %v256_v9  ;;  %v259_v14 = vld [vmem:[%s1195_s1 + $0x48] sm:$0xff] (!%p169_p2)  ;;  %v260_v17 = vld [vmem:[%s1195_s1 + $0x50] sm:$0xff] (!%p169_p2)  ;;  %v261_v18 = vld [vmem:[%s1195_s1 + $0x58] sm:$0xff] (!%p169_p2) }
   0x9   : > { %879 = vmatpush3.bf16.msra.mxu0 (!%p169_p2), %v876_v3  ;;  %916 = vmatpush3.bf16.msra.mxu1 (!%p169_p2), %v876_v3  ;;  %v892_v16 = vpack.c.bf16 (!%p169_p2), %v259_v14, %v258_v13  ;;  %v896_v19 = vpack.c.bf16 (!%p169_p2), %v261_v18, %v260_v17  ;;  %v262_v20 = vld [vmem:[%s1195_s1 + $0x60] sm:$0xff] (!%p169_p2)  ;;  %v263_v21 = vld [vmem:[%s1195_s1 + $0x68] sm:$0xff] (!%p169_p2)  ;;  %v264_v23 = vld [vmem:[%s1195_s1 + $0x70] sm:$0xff] (!%p169_p2) }
   0xa   : > { %881 = vmatprep.subr.bf16.mxu0 (!%p169_p2), %v880_v5  ;;  %909 = vmatprep.subr.bf16.mxu1 (!%p169_p2), %v880_v5  ;;  %v900_v22 = vpack.c.bf16 (!%p169_p2), %v263_v21, %v262_v20  ;;  %v265_v24 = vld [vmem:[%s1195_s1 + $0x78] sm:$0xff] (!%p169_p2) }
   0xb   : > { %v904_v25 = vpack.c.bf16 (!%p169_p2), %v265_v24, %v264_v23 }
   0xd   : > { %s1200_s23 = smov (!%p201_p3, %s742_s23), 63  ;;  %883 = vmatpush3.bf16.msra.mxu0 %v880_v5  ;;  %917 = vmatpush3.bf16.msra.mxu1 %v880_v5  ;;  %s1202_s16 = smov (!%p212_p4, %s971_s16), 1 }
   0xe   : > { %s743_s30 = sshll.u32 %s1200_s23, 3  ;;  %885 = vmatprep.subr.bf16.mxu0 %v884_v8  ;;  %910 = vmatprep.subr.bf16.mxu1 %v884_v8  ;;  %s214_s9 = scalar_lea.vmem %s1197_s3, %s1202_s16 }
   0xf   : > { %s1008_s11 = scalar_lea.vmem %s1194_s0, %s743_s30  ;;  %s1071_s8 = scalar_lea.vmem %s1196_s2, %s743_s30 }
  0x10   : > { %v218_v11 = vld [vmem:[%s1008_s11] sm:$0xff]  ;;  %v219_v26 = vld [vmem:[%s1008_s11 + $0x8] sm:$0xff]  ;;  %v220_v27 = vld [vmem:[%s1008_s11 + $0x10] sm:$0xff]  ;;  %s217_s12 = scalar_lea.vmem %s1198_s4, %s1202_s16 }
  0x11   : > { %828 = vmatprep.mubr.f32.mxu0 %v218_v11  ;;  %887 = vmatpush3.bf16.msra.mxu0 %v884_v8  ;;  %v234_v15 = vld [vmem:[%s1008_s11 + $0x80] sm:$0xff]  ;;  %v235_v28 = vld [vmem:[%s1008_s11 + $0x88] sm:$0xff]  ;;  %v236_v29 = vld [vmem:[%s1008_s11 + $0x90] sm:$0xff] }
  0x12   : > { %889 = vmatprep.subr.bf16.mxu0 %v888_v12  ;;  %918 = vmatpush3.bf16.msra.mxu1 %v884_v8  ;;  %v221_v30 = vld [vmem:[%s1008_s11 + $0x18] sm:$0xff]  ;;  %v222_v31 = vld [vmem:[%s1008_s11 + $0x20] sm:$0xff]  ;;  %v223_v34 = vld [vmem:[%s1008_s11 + $0x28] sm:$0xff] }
  0x13   : > { %911 = vmatprep.subr.bf16.mxu1 %v888_v12  ;;  %852 = vmatprep.mubr.f32.mxu1 %v234_v15  ;;  %v237_v32 = vld [vmem:[%s1008_s11 + $0x98] sm:$0xff]  ;;  %v238_v33 = vld [vmem:[%s1008_s11 + $0xa0] sm:$0xff]  ;;  %v224_v35 = vld [vmem:[%s1008_s11 + $0x30] sm:$0xff] }
  0x14   : > { %v239_v36 = vld [vmem:[%s1008_s11 + $0xa8] sm:$0xff]  ;;  %v240_v37 = vld [vmem:[%s1008_s11 + $0xb0] sm:$0xff]  ;;  %v225_v38 = vld [vmem:[%s1008_s11 + $0x38] sm:$0xff] }
  0x15   : > { %891 = vmatpush3.bf16.msra.mxu0 %v888_v12  ;;  %v226_v39 = vld [vmem:[%s1008_s11 + $0x40] sm:$0xff]  ;;  %v241_v40 = vld [vmem:[%s1008_s11 + $0xb8] sm:$0xff]  ;;  %v227_v42 = vld [vmem:[%s1008_s11 + $0x48] sm:$0xff] }
  0x16   : > { %893 = vmatprep.subr.bf16.mxu0 %v892_v16  ;;  %919 = vmatpush3.bf16.msra.mxu1 %v888_v12  ;;  %v242_v41 = vld [vmem:[%s1008_s11 + $0xc0] sm:$0xff]  ;;  %v228_v43 = vld [vmem:[%s1008_s11 + $0x50] sm:$0xff]  ;;  %v243_v44 = vld [vmem:[%s1008_s11 + $0xc8] sm:$0xff] }
  0x17   : > { %912 = vmatprep.subr.bf16.mxu1 %v892_v16  ;;  %v244_v45 = vld [vmem:[%s1008_s11 + $0xd0] sm:$0xff]  ;;  %v229_v46 = vld [vmem:[%s1008_s11 + $0x58] sm:$0xff]  ;;  %v230_v47 = vld [vmem:[%s1008_s11 + $0x60] sm:$0xff] }
  0x18   : > { %v245_v48 = vld [vmem:[%s1008_s11 + $0xd8] sm:$0xff]  ;;  %v246_v49 = vld [vmem:[%s1008_s11 + $0xe0] sm:$0xff]  ;;  %v231_v50 = vld [vmem:[%s1008_s11 + $0x68] sm:$0xff] }
  0x19   : > { %895 = vmatpush3.bf16.msra.mxu0 %v892_v16  ;;  %v232_v51 = vld [vmem:[%s1008_s11 + $0x70] sm:$0xff]  ;;  %v247_v52 = vld [vmem:[%s1008_s11 + $0xe8] sm:$0xff]  ;;  %v233_v54 = vld [vmem:[%s1008_s11 + $0x78] sm:$0xff] }
  0x1a   : > { %897 = vmatprep.subr.bf16.mxu0 %v896_v19  ;;  %920 = vmatpush3.bf16.msra.mxu1 %v892_v16  ;;  %v248_v53 = vld [vmem:[%s1008_s11 + $0xf0] sm:$0xff]  ;;  %v249_v55 = vld [vmem:[%s1008_s11 + $0xf8] sm:$0xff] }
  0x1b   : > { %913 = vmatprep.subr.bf16.mxu1 %v896_v19 }
  0x1d   : > { %899 = vmatpush3.bf16.msra.mxu0 %v896_v19 }
  0x1e   : > { %901 = vmatprep.subr.bf16.mxu0 %v900_v22  ;;  %921 = vmatpush3.bf16.msra.mxu1 %v896_v19 }
  0x1f   : > { %914 = vmatprep.subr.bf16.mxu1 %v900_v22 }
  0x21   : > { %903 = vmatpush3.bf16.msra.mxu0 %v900_v22 }
  0x22   : > { %905 = vmatprep.subr.bf16.mxu0 %v904_v25  ;;  %922 = vmatpush3.bf16.msra.mxu1 %v900_v22 }
  0x23   : > { %915 = vmatprep.subr.bf16.mxu1 %v904_v25 }
  0x25   : > { %907 = vmatpush3.bf16.msra.mxu0 %v904_v25 }
  0x26   : > { %923 = vmatpush3.bf16.msra.mxu1 %v904_v25 }
  0x28   : > { %829 = vmatmul.mubr.f32.vlgmr.msra.gmra.mrb[0].mxu0 %v219_v26 }
  0x29   : > { %831 = vmatprep.mubr.f32.mxu0 %v220_v27  ;;  %853 = vmatmul.mubr.f32.vlgmr.msra.gmra.mrb[0].mxu1 %v235_v28 }
  0x2a   : > { %855 = vmatprep.mubr.f32.mxu1 %v236_v29 }
  0x2c   : > { %832 = vmatmul.mubr.f32.gmra.mrb[2].mxu0 %v221_v30 }
  0x2d   : > { %834 = vmatprep.mubr.f32.mxu0 %v222_v31  ;;  %856 = vmatmul.mubr.f32.gmra.mrb[2].mxu1 %v237_v32 }
  0x2e   : > { %858 = vmatprep.mubr.f32.mxu1 %v238_v33 }
  0x30   : > { %835 = vmatmul.mubr.f32.gmra.mrb[4].mxu0 %v223_v34 }
  0x31   : > { %837 = vmatprep.mubr.f32.mxu0 %v224_v35  ;;  %859 = vmatmul.mubr.f32.gmra.mrb[4].mxu1 %v239_v36 }
  0x32   : > { %861 = vmatprep.mubr.f32.mxu1 %v240_v37 }
  0x34   : > { %838 = vmatmul.mubr.f32.gmra.mrb[6].mxu0 %v225_v38 }
  0x35   : > { %840 = vmatprep.mubr.f32.mxu0 %v226_v39  ;;  %862 = vmatmul.mubr.f32.gmra.mrb[6].mxu1 %v241_v40 }
  0x36   : > { %864 = vmatprep.mubr.f32.mxu1 %v242_v41 }
  0x38   : > { %841 = vmatmul.mubr.f32.gmra.mrb[8].mxu0 %v227_v42 }
  0x39   : > { %843 = vmatprep.mubr.f32.mxu0 %v228_v43  ;;  %865 = vmatmul.mubr.f32.gmra.mrb[8].mxu1 %v243_v44 }
  0x3a   : > { %867 = vmatprep.mubr.f32.mxu1 %v244_v45 }
  0x3c   : > { %844 = vmatmul.mubr.f32.gmra.mrb[10].mxu0 %v229_v46 }
  0x3d   : > { %846 = vmatprep.mubr.f32.mxu0 %v230_v47  ;;  %868 = vmatmul.mubr.f32.gmra.mrb[10].mxu1 %v245_v48 }
  0x3e   : > { %870 = vmatprep.mubr.f32.mxu1 %v246_v49 }
  0x40   : > { %847 = vmatmul.mubr.f32.gmra.mrb[12].mxu0 %v231_v50 }
  0x41   : > { %849 = vmatprep.mubr.f32.mxu0 %v232_v51  ;;  %871 = vmatmul.mubr.f32.gmra.mrb[12].mxu1 %v247_v52 }
  0x42   : > { %873 = vmatprep.mubr.f32.mxu1 %v248_v53 }
  0x44   : > { %850 = vmatmul.mubr.f32.gmra.mrb[14].mxu0 %v233_v54 }
  0x45   : > { %874 = vmatmul.mubr.f32.gmra.mrb[14].mxu1 %v249_v55 }
  0xfb   : > { %v830_v56 = vpop.f32.mrb[0].mxu0 }
  0xfc   : > { %492 = vst [vmem:[%s1071_s8 + $0x8] sm:$0xff] %v830_v56  ;;  %v562_v57 = vmul.f32 %v830_v56, %v830_v56  ;;  %v332_v58 = vpop.f32.mrb[1].mxu0  ;;  %v1074_v59 = vpop.f32.mrb[0].mxu1 }
  0xfd   : > { %491 = vst [vmem:[%s1071_s8] sm:$0xff] %v332_v58  ;;  %v523_v60 = vadd.f32 %v830_v56, %v332_v58  ;;  %v561_v61 = vmul.f32 %v332_v58, %v332_v58  ;;  %508 = vst [vmem:[%s1071_s8 + $0x88] sm:$0xff] %v1074_v59  ;;  %v1079_v62 = vpop.f32.mrb[1].mxu1 }
  0xfe   : > { %507 = vst [vmem:[%s1071_s8 + $0x80] sm:$0xff] %v1079_v62 }
  0xff   : > { %v593_v63 = vadd.f32 %v562_v57, %v561_v61  ;;  %v833_v0 = vpop.f32.mrb[2].mxu0 }
 0x100   : > { %494 = vst [vmem:[%s1071_s8 + $0x18] sm:$0xff] %v833_v0  ;;  %v342_v1 = vpop.f32.mrb[3].mxu0  ;;  %v1084_v2 = vpop.f32.mrb[2].mxu1  ;;  %v564_v6 = vmul.f32 %v833_v0, %v833_v0 }
 0x101   : > { %493 = vst [vmem:[%s1071_s8 + $0x10] sm:$0xff] %v342_v1  ;;  %v524_v3 = vadd.f32 %v523_v60, %v342_v1  ;;  %v563_v4 = vmul.f32 %v342_v1, %v342_v1  ;;  %510 = vst [vmem:[%s1071_s8 + $0x98] sm:$0xff] %v1084_v2  ;;  %v1089_v5 = vpop.f32.mrb[3].mxu1 }
 0x102   : > { %509 = vst [vmem:[%s1071_s8 + $0x90] sm:$0xff] %v1089_v5 }
 0x103   : > { %v594_v7 = vadd.f32 %v593_v63, %v563_v4  ;;  %v836_v8 = vpop.f32.mrb[4].mxu0  ;;  %v525_v9 = vadd.f32 %v833_v0, %v524_v3 }
 0x104   : > { %496 = vst [vmem:[%s1071_s8 + $0x28] sm:$0xff] %v836_v8  ;;  %v352_v10 = vpop.f32.mrb[5].mxu0  ;;  %v1094_v11 = vpop.f32.mrb[4].mxu1  ;;  %v566_v16 = vmul.f32 %v836_v8, %v836_v8 }
 0x105   : > { %495 = vst [vmem:[%s1071_s8 + $0x20] sm:$0xff] %v352_v10  ;;  %v526_v12 = vadd.f32 %v525_v9, %v352_v10  ;;  %v565_v13 = vmul.f32 %v352_v10, %v352_v10  ;;  %v595_v14 = vadd.f32 %v594_v7, %v564_v6  ;;  %512 = vst [vmem:[%s1071_s8 + $0xa8] sm:$0xff] %v1094_v11  ;;  %v1099_v15 = vpop.f32.mrb[5].mxu1 }
 0x106   : > { %511 = vst [vmem:[%s1071_s8 + $0xa0] sm:$0xff] %v1099_v15  ;;  %v577_v9 = vmul.f32 %v1079_v62, %v1079_v62 }
 0x107   : > { %v596_v17 = vadd.f32 %v595_v14, %v565_v13  ;;  %v839_v18 = vpop.f32.mrb[6].mxu0  ;;  %v527_v19 = vadd.f32 %v836_v8, %v526_v12  ;;  %v578_v13 = vmul.f32 %v1074_v59, %v1074_v59 }
 0x108   : > { %498 = vst [vmem:[%s1071_s8 + $0x38] sm:$0xff] %v839_v18  ;;  %v362_v20 = vpop.f32.mrb[7].mxu0  ;;  %v1104_v21 = vpop.f32.mrb[6].mxu1  ;;  %v568_v26 = vmul.f32 %v839_v18, %v839_v18 }
 0x109   : > { %497 = vst [vmem:[%s1071_s8 + $0x30] sm:$0xff] %v362_v20  ;;  %v528_v22 = vadd.f32 %v527_v19, %v362_v20  ;;  %v567_v23 = vmul.f32 %v362_v20, %v362_v20  ;;  %v597_v24 = vadd.f32 %v596_v17, %v566_v16  ;;  %514 = vst [vmem:[%s1071_s8 + $0xb8] sm:$0xff] %v1104_v21  ;;  %v1109_v25 = vpop.f32.mrb[7].mxu1 }
 0x10a   : > { %513 = vst [vmem:[%s1071_s8 + $0xb0] sm:$0xff] %v1109_v25  ;;  %v579_v17 = vmul.f32 %v1089_v5, %v1089_v5  ;;  %v580_v20 = vmul.f32 %v1084_v2, %v1084_v2 }
 0x10b   : > { %v598_v27 = vadd.f32 %v597_v24, %v567_v23  ;;  %v842_v28 = vpop.f32.mrb[8].mxu0  ;;  %v529_v29 = vadd.f32 %v839_v18, %v528_v22 }
 0x10c   : > { %500 = vst [vmem:[%s1071_s8 + $0x48] sm:$0xff] %v842_v28  ;;  %v372_v30 = vpop.f32.mrb[9].mxu0  ;;  %v1114_v31 = vpop.f32.mrb[8].mxu1  ;;  %v570_v36 = vmul.f32 %v842_v28, %v842_v28 }
 0x10d   : > { %499 = vst [vmem:[%s1071_s8 + $0x40] sm:$0xff] %v372_v30  ;;  %v530_v32 = vadd.f32 %v529_v29, %v372_v30  ;;  %v569_v33 = vmul.f32 %v372_v30, %v372_v30  ;;  %v599_v34 = vadd.f32 %v598_v27, %v568_v26  ;;  %516 = vst [vmem:[%s1071_s8 + $0xc8] sm:$0xff] %v1114_v31  ;;  %v1119_v35 = vpop.f32.mrb[9].mxu1 }
 0x10e   : > { %515 = vst [vmem:[%s1071_s8 + $0xc0] sm:$0xff] %v1119_v35 }
 0x10f   : > { %v600_v37 = vadd.f32 %v599_v34, %v569_v33  ;;  %v845_v38 = vpop.f32.mrb[10].mxu0  ;;  %v531_v39 = vadd.f32 %v842_v28, %v530_v32 }
 0x110   : > { %502 = vst [vmem:[%s1071_s8 + $0x58] sm:$0xff] %v845_v38  ;;  %v382_v40 = vpop.f32.mrb[11].mxu0  ;;  %v1124_v41 = vpop.f32.mrb[10].mxu1  ;;  %v572_v46 = vmul.f32 %v845_v38, %v845_v38 }
 0x111   : > { %501 = vst [vmem:[%s1071_s8 + $0x50] sm:$0xff] %v382_v40  ;;  %v532_v42 = vadd.f32 %v531_v39, %v382_v40  ;;  %v571_v43 = vmul.f32 %v382_v40, %v382_v40  ;;  %v601_v44 = vadd.f32 %v600_v37, %v570_v36  ;;  %518 = vst [vmem:[%s1071_s8 + $0xd8] sm:$0xff] %v1124_v41  ;;  %v1129_v45 = vpop.f32.mrb[11].mxu1 }
 0x112   : > { %517 = vst [vmem:[%s1071_s8 + $0xd0] sm:$0xff] %v1129_v45 }
 0x113   : > { %v602_v47 = vadd.f32 %v601_v44, %v571_v43  ;;  %v848_v48 = vpop.f32.mrb[12].mxu0  ;;  %v533_v49 = vadd.f32 %v845_v38, %v532_v42 }
 0x114   : > { %504 = vst [vmem:[%s1071_s8 + $0x68] sm:$0xff] %v848_v48  ;;  %v392_v50 = vpop.f32.mrb[13].mxu0  ;;  %v1134_v51 = vpop.f32.mrb[12].mxu1  ;;  %v574_v56 = vmul.f32 %v848_v48, %v848_v48 }
 0x115   : > { %503 = vst [vmem:[%s1071_s8 + $0x60] sm:$0xff] %v392_v50  ;;  %v534_v52 = vadd.f32 %v533_v49, %v392_v50  ;;  %v573_v53 = vmul.f32 %v392_v50, %v392_v50  ;;  %v603_v54 = vadd.f32 %v602_v47, %v572_v46  ;;  %520 = vst [vmem:[%s1071_s8 + $0xe8] sm:$0xff] %v1134_v51  ;;  %v472_v55 = vpop.f32.mrb[13].mxu1 }
 0x116   : > { %519 = vst [vmem:[%s1071_s8 + $0xe0] sm:$0xff] %v472_v55  ;;  %v589_v43 = vmul.f32 %v472_v55, %v472_v55  ;;  %v590_v47 = vmul.f32 %v1134_v51, %v1134_v51 }
 0x117   : > { %v604_v57 = vadd.f32 %v603_v54, %v573_v53  ;;  %v851_v58 = vpop.f32.mrb[14].mxu0  ;;  %v535_v60 = vadd.f32 %v848_v48, %v534_v52 }
 0x118   : > { %506 = vst [vmem:[%s1071_s8 + $0x78] sm:$0xff] %v851_v58  ;;  %v402_v61 = vpop.f32.mrb[15].mxu0  ;;  %v875_v63 = vpop.f32.mrb[14].mxu1  ;;  %v576_v6 = vmul.f32 %v851_v58, %v851_v58 }
 0x119   : > { %505 = vst [vmem:[%s1071_s8 + $0x70] sm:$0xff] %v402_v61  ;;  %v536_v0 = vadd.f32 %v535_v60, %v402_v61  ;;  %v575_v1 = vmul.f32 %v402_v61, %v402_v61  ;;  %v605_v3 = vadd.f32 %v604_v57, %v574_v56  ;;  %522 = vst [vmem:[%s1071_s8 + $0xf8] sm:$0xff] %v875_v63  ;;  %v482_v4 = vpop.f32.mrb[15].mxu1 }
 0x11a   : > { %521 = vst [vmem:[%s1071_s8 + $0xf0] sm:$0xff] %v482_v4  ;;  %v591_v49 = vmul.f32 %v482_v4, %v482_v4  ;;  %v592_v52 = vmul.f32 %v875_v63, %v875_v63 }
 0x11b   : > { %v537_v7 = vadd.f32 %v851_v58, %v536_v0  ;;  %v606_v8 = vadd.f32 %v605_v3, %v575_v1 }
 0x11d   : > { %v607_v10 = vadd.f32 %v606_v8, %v576_v6  ;;  %v538_v12 = vadd.f32 %v537_v7, %v1079_v62  ;;  %v581_v62 = vmul.f32 %v1099_v15, %v1099_v15 }
 0x11f   : > { %v608_v14 = vadd.f32 %v607_v10, %v577_v9  ;;  %v539_v16 = vadd.f32 %v1074_v59, %v538_v12  ;;  %v582_v59 = vmul.f32 %v1094_v11, %v1094_v11 }
 0x121   : > { %v540_v18 = vadd.f32 %v539_v16, %v1089_v5  ;;  %v609_v19 = vadd.f32 %v608_v14, %v578_v13  ;;  %v583_v5 = vmul.f32 %v1109_v25, %v1109_v25 }
 0x123   : > { %v610_v22 = vadd.f32 %v609_v19, %v579_v17  ;;  %v541_v23 = vadd.f32 %v1084_v2, %v540_v18  ;;  %v584_v2 = vmul.f32 %v1104_v21, %v1104_v21 }
 0x125   : > { %v542_v24 = vadd.f32 %v541_v23, %v1099_v15  ;;  %v611_v26 = vadd.f32 %v610_v22, %v580_v20  ;;  %v585_v15 = vmul.f32 %v1119_v35, %v1119_v35 }
 0x127   : > { %v612_v27 = vadd.f32 %v611_v26, %v581_v62  ;;  %v543_v28 = vadd.f32 %v1094_v11, %v542_v24  ;;  %v586_v11 = vmul.f32 %v1114_v31, %v1114_v31 }
 0x129   : > { %v544_v29 = vadd.f32 %v543_v28, %v1109_v25  ;;  %v613_v30 = vadd.f32 %v612_v27, %v582_v59  ;;  %v587_v25 = vmul.f32 %v1129_v45, %v1129_v45 }
 0x12b   : > { %v614_v32 = vadd.f32 %v613_v30, %v583_v5  ;;  %v545_v33 = vadd.f32 %v1104_v21, %v544_v29  ;;  %v588_v21 = vmul.f32 %v1124_v41, %v1124_v41 }
 0x12d   : > { %v546_v34 = vadd.f32 %v545_v33, %v1119_v35  ;;  %v615_v36 = vadd.f32 %v614_v32, %v584_v2 }
 0x12f   : > { %v616_v37 = vadd.f32 %v615_v36, %v585_v15  ;;  %v547_v38 = vadd.f32 %v1114_v31, %v546_v34 }
 0x131   : > { %v548_v39 = vadd.f32 %v547_v38, %v1129_v45  ;;  %v617_v40 = vadd.f32 %v616_v37, %v586_v11 }
 0x133   : > { %v618_v42 = vadd.f32 %v617_v40, %v587_v25  ;;  %v549_v35 = vadd.f32 %v1124_v41, %v548_v39 }
 0x135   : > { %v550_v44 = vadd.f32 %v549_v35, %v472_v55  ;;  %v619_v46 = vadd.f32 %v618_v42, %v588_v21 }
 0x137   : > { %v620_v31 = vadd.f32 %v619_v46, %v589_v43  ;;  %v551_v48 = vadd.f32 %v1134_v51, %v550_v44 }
 0x139   : > { %v552_v45 = vadd.f32 %v551_v48, %v482_v4  ;;  %v621_v50 = vadd.f32 %v620_v31, %v590_v47 }
 0x13b   : > { %v553_v53 = vadd.f32 %v875_v63, %v552_v45  ;;  %v622_v54 = vadd.f32 %v621_v50, %v591_v49 }
 0x13d   : > { %v554_v56 = vrot.slane %v553_v53, 4  ;;  %v623_v57 = vadd.f32 %v622_v54, %v592_v52 }
 0x13f   : > { %v555_v41 = vadd.f32 %v554_v56, %v553_v53  ;;  %v624_v58 = vrot.slane %v623_v57, 4 }
 0x141   : > { %v556_v55 = vrot.slane %v555_v41, 2  ;;  %v625_v60 = vadd.f32 %v624_v58, %v623_v57 }
 0x143   : > { %v557_v61 = vadd.f32 %v556_v55, %v555_v41  ;;  %v626_v0 = vrot.slane %v625_v60, 2 }
 0x145   : > { %v558_v1 = vrot.slane %v557_v61, 1  ;;  %v627_v3 = vadd.f32 %v626_v0, %v625_v60 }
 0x147   : > { %v559_v51 = vadd.f32 %v558_v1, %v557_v61  ;;  %v628_v4 = vrot.slane %v627_v3, 1 }
 0x149   : > { %560 = vst [vmem:[%s214_s9] sm:$0x1] %v559_v51  ;;  %v629_v63 = vadd.f32 %v628_v4, %v627_v3 }
 0x14b   : > { %630 = vst [vmem:[%s217_s12] sm:$0x1] %v629_v63 }
 0x14c PF: > { %s15_s15 = sadd.s32 1, %s938_s15  }
 0x14d   : > { %p12_p5 = scmp.ge.s32.totalorder %s15_s15, 4  }
 0x14f   :  { %14 = sbr.rel (!%p12_p5) target bundleno = 1 (0x1), region = 82 }

// kernel: aunet_encoder_forward.14
= control target key start
LH: loop header
LB: loop body
LE: loop exit
PB: predicated region body
PF: predicated region fallthrough
CT: control target
= control target key end

     0   :  { %vm129_vm0 = vcmask 64512   ;;  %s431_s0 = inlined_call_operand.vmem [shape: f32[128,8], index: 0, kind: input, shape index: {}]   ;;  %s432_s1 = inlined_call_operand.vmem [shape: f32[128,8], index: 1, kind: input, shape index: {}]   ;;  %s433_s2 = inlined_call_operand.vmem [shape: f32[128,8], index: 2, kind: input, shape index: {}]   ;;  %s434_s3 = inlined_call_operand.vmem [shape: f32[128,8], index: 3, kind: input, shape index: {}]   ;;  %s435_s4 = inlined_call_operand.vmem [shape: f32[128,8], index: 4, kind: output, shape index: {}]  }
   0x1   :  { %v17_v0 = vld [vmem:[%s431_s0] sm:$0xff]  ;;  %v18_v5 = vld [vmem:[%s431_s0 + $0x8] sm:$0xff]  ;;  %v19_v11 = vld [vmem:[%s431_s0 + $0x10] sm:$0xff] }
   0x2   :  { %v33_v1 = vld [vmem:[%s432_s1] sm:$0xff]  ;;  %v34_v6 = vld [vmem:[%s432_s1 + $0x8] sm:$0xff]  ;;  %v35_v13 = vld [vmem:[%s432_s1 + $0x10] sm:$0xff] }
   0x3   :  { %v65_v2 = vld [vmem:[%s433_s2] sm:$0xff]  ;;  %v49_v3 = vmax.f32 %v17_v0, %v33_v1  ;;  %v50_v8 = vmax.f32 %v18_v5, %v34_v6  ;;  %v66_v9 = vld [vmem:[%s433_s2 + $0x8] sm:$0xff]  ;;  %v67_v14 = vld [vmem:[%s433_s2 + $0x10] sm:$0xff]  ;;  %v51_v17 = vmax.f32 %v19_v11, %v35_v13 }
   0x4   :  { %v81_v4 = vld [vmem:[%s434_s3] sm:$0xff]  ;;  %v82_v10 = vld [vmem:[%s434_s3 + $0x8] sm:$0xff]  ;;  %v83_v15 = vld [vmem:[%s434_s3 + $0x10] sm:$0xff] }
   0x5   :  { %v97_v7 = vmax.f32 %v65_v2, %v81_v4  ;;  %v98_v12 = vmax.f32 %v66_v9, %v82_v10  ;;  %v99_v18 = vmax.f32 %v67_v14, %v83_v15  ;;  %v20_v19 = vld [vmem:[%s431_s0 + $0x18] sm:$0xff]  ;;  %v21_v25 = vld [vmem:[%s431_s0 + $0x20] sm:$0xff]  ;;  %v22_v32 = vld [vmem:[%s431_s0 + $0x28] sm:$0xff] }
   0x6   :  { %v36_v20 = vld [vmem:[%s432_s1 + $0x18] sm:$0xff]  ;;  %v37_v26 = vld [vmem:[%s432_s1 + $0x20] sm:$0xff]  ;;  %v38_v34 = vld [vmem:[%s432_s1 + $0x28] sm:$0xff] }
   0x7   :  { %v113_v16 = vmax.f32 %v49_v3, %v97_v7  ;;  %v68_v21 = vld [vmem:[%s433_s2 + $0x18] sm:$0xff]  ;;  %v114_v22 = vmax.f32 %v50_v8, %v98_v12  ;;  %v52_v23 = vmax.f32 %v20_v19, %v36_v20  ;;  %v115_v27 = vmax.f32 %v51_v17, %v99_v18  ;;  %v69_v30 = vld [vmem:[%s433_s2 + $0x20] sm:$0xff]  ;;  %v70_v35 = vld [vmem:[%s433_s2 + $0x28] sm:$0xff] }
   0x8   :  { %v84_v24 = vld [vmem:[%s434_s3 + $0x18] sm:$0xff]  ;;  %v53_v29 = vmax.f32 %v21_v25, %v37_v26  ;;  %v85_v31 = vld [vmem:[%s434_s3 + $0x20] sm:$0xff]  ;;  %v86_v36 = vld [vmem:[%s434_s3 + $0x28] sm:$0xff]  ;;  %v54_v38 = vmax.f32 %v22_v32, %v38_v34 }
   0x9   :  { %130 = vst.msk [vmem:[%s435_s4] sm:$0xff] %vm129_vm0, %v113_v16  ;;  %v100_v28 = vmax.f32 %v68_v21, %v84_v24  ;;  %131 = vst.msk [vmem:[%s435_s4 + $0x8] sm:$0xff] %vm129_vm0, %v114_v22  ;;  %v101_v33 = vmax.f32 %v69_v30, %v85_v31  ;;  %v102_v39 = vmax.f32 %v70_v35, %v86_v36  ;;  %v23_v40 = vld [vmem:[%s431_s0 + $0x30] sm:$0xff]  ;;  %v24_v46 = vld [vmem:[%s431_s0 + $0x38] sm:$0xff] }
   0xa   :  { %132 = vst.msk [vmem:[%s435_s4 + $0x10] sm:$0xff] %vm129_vm0, %v115_v27  ;;  %v39_v41 = vld [vmem:[%s432_s1 + $0x30] sm:$0xff]  ;;  %v40_v47 = vld [vmem:[%s432_s1 + $0x38] sm:$0xff]  ;;  %v25_v53 = vld [vmem:[%s431_s0 + $0x40] sm:$0xff] }
   0xb   :  { %v116_v37 = vmax.f32 %v52_v23, %v100_v28  ;;  %v71_v42 = vld [vmem:[%s433_s2 + $0x30] sm:$0xff]  ;;  %v117_v43 = vmax.f32 %v53_v29, %v101_v33  ;;  %v55_v44 = vmax.f32 %v23_v40, %v39_v41  ;;  %v118_v48 = vmax.f32 %v54_v38, %v102_v39  ;;  %v72_v51 = vld [vmem:[%s433_s2 + $0x38] sm:$0xff]  ;;  %v41_v55 = vld [vmem:[%s432_s1 + $0x40] sm:$0xff] }
   0xc   :  { %v87_v45 = vld [vmem:[%s434_s3 + $0x30] sm:$0xff]  ;;  %v56_v50 = vmax.f32 %v24_v46, %v40_v47  ;;  %v88_v52 = vld [vmem:[%s434_s3 + $0x38] sm:$0xff]  ;;  %v73_v56 = vld [vmem:[%s433_s2 + $0x40] sm:$0xff]  ;;  %v57_v59 = vmax.f32 %v25_v53, %v41_v55 }
   0xd   :  { %133 = vst.msk [vmem:[%s435_s4 + $0x18] sm:$0xff] %vm129_vm0, %v116_v37  ;;  %v103_v49 = vmax.f32 %v71_v42, %v87_v45  ;;  %134 = vst.msk [vmem:[%s435_s4 + $0x20] sm:$0xff] %vm129_vm0, %v117_v43  ;;  %v104_v54 = vmax.f32 %v72_v51, %v88_v52  ;;  %v89_v57 = vld [vmem:[%s434_s3 + $0x40] sm:$0xff]  ;;  %v26_v61 = vld [vmem:[%s431_s0 + $0x48] sm:$0xff] }
   0xe   :  { %135 = vst.msk [vmem:[%s435_s4 + $0x28] sm:$0xff] %vm129_vm0, %v118_v48  ;;  %v105_v60 = vmax.f32 %v73_v56, %v89_v57  ;;  %v42_v62 = vld [vmem:[%s432_s1 + $0x48] sm:$0xff]  ;;  %v27_v3 = vld [vmem:[%s431_s0 + $0x50] sm:$0xff]  ;;  %v28_v10 = vld [vmem:[%s431_s0 + $0x58] sm:$0xff] }
   0xf   :  { %v119_v58 = vmax.f32 %v55_v44, %v103_v49  ;;  %v74_v63 = vld [vmem:[%s433_s2 + $0x48] sm:$0xff]  ;;  %v120_v0 = vmax.f32 %v56_v50, %v104_v54  ;;  %v58_v1 = vmax.f32 %v26_v61, %v42_v62  ;;  %v43_v4 = vld [vmem:[%s432_s1 + $0x50] sm:$0xff]  ;;  %v44_v12 = vld [vmem:[%s432_s1 + $0x58] sm:$0xff] }
  0x10   :  { %v90_v2 = vld [vmem:[%s434_s3 + $0x48] sm:$0xff]  ;;  %v121_v5 = vmax.f32 %v57_v59, %v105_v60  ;;  %v59_v7 = vmax.f32 %v27_v3, %v43_v4  ;;  %v75_v8 = vld [vmem:[%s433_s2 + $0x50] sm:$0xff]  ;;  %v76_v13 = vld [vmem:[%s433_s2 + $0x58] sm:$0xff]  ;;  %v60_v16 = vmax.f32 %v28_v10, %v44_v12 }
  0x11   :  { %136 = vst.msk [vmem:[%s435_s4 + $0x30] sm:$0xff] %vm129_vm0, %v119_v58  ;;  %v106_v6 = vmax.f32 %v74_v63, %v90_v2  ;;  %v91_v9 = vld [vmem:[%s434_s3 + $0x50] sm:$0xff]  ;;  %137 = vst.msk [vmem:[%s435_s4 + $0x38] sm:$0xff] %vm129_vm0, %v120_v0  ;;  %v92_v14 = vld [vmem:[%s434_s3 + $0x58] sm:$0xff] }
  0x12   :  { %v107_v11 = vmax.f32 %v75_v8, %v91_v9  ;;  %138 = vst.msk [vmem:[%s435_s4 + $0x40] sm:$0xff] %vm129_vm0, %v121_v5  ;;  %v108_v17 = vmax.f32 %v76_v13, %v92_v14  ;;  %v29_v18 = vld [vmem:[%s431_s0 + $0x60] sm:$0xff]  ;;  %v30_v24 = vld [vmem:[%s431_s0 + $0x68] sm:$0xff]  ;;  %v31_v31 = vld [vmem:[%s431_s0 + $0x70] sm:$0xff] }
  0x13   :  { %v122_v15 = vmax.f32 %v58_v1, %v106_v6  ;;  %v45_v19 = vld [vmem:[%s432_s1 + $0x60] sm:$0xff]  ;;  %v46_v25 = vld [vmem:[%s432_s1 + $0x68] sm:$0xff]  ;;  %v47_v33 = vld [vmem:[%s432_s1 + $0x70] sm:$0xff] }
  0x14   :  { %v77_v20 = vld [vmem:[%s433_s2 + $0x60] sm:$0xff]  ;;  %v123_v21 = vmax.f32 %v59_v7, %v107_v11  ;;  %v61_v22 = vmax.f32 %v29_v18, %v45_v19  ;;  %v124_v26 = vmax.f32 %v60_v16, %v108_v17  ;;  %v62_v28 = vmax.f32 %v30_v24, %v46_v25  ;;  %v78_v29 = vld [vmem:[%s433_s2 + $0x68] sm:$0xff]  ;;  %v79_v34 = vld [vmem:[%s433_s2 + $0x70] sm:$0xff] }
  0x15   :  { %v93_v23 = vld [vmem:[%s434_s3 + $0x60] sm:$0xff]  ;;  %139 = vst.msk [vmem:[%s435_s4 + $0x48] sm:$0xff] %vm129_vm0, %v122_v15  ;;  %v94_v30 = vld [vmem:[%s434_s3 + $0x68] sm:$0xff]  ;;  %v95_v35 = vld [vmem:[%s434_s3 + $0x70] sm:$0xff]  ;;  %v63_v37 = vmax.f32 %v31_v31, %v47_v33 }
  0x16   :  { %v109_v27 = vmax.f32 %v77_v20, %v93_v23  ;;  %140 = vst.msk [vmem:[%s435_s4 + $0x50] sm:$0xff] %vm129_vm0, %v123_v21  ;;  %v110_v32 = vmax.f32 %v78_v29, %v94_v30  ;;  %141 = vst.msk [vmem:[%s435_s4 + $0x58] sm:$0xff] %vm129_vm0, %v124_v26  ;;  %v111_v38 = vmax.f32 %v79_v34, %v95_v35  ;;  %v32_v39 = vld [vmem:[%s431_s0 + $0x78] sm:$0xff] }
  0x17   :  { %v48_v40 = vld [vmem:[%s432_s1 + $0x78] sm:$0xff] }
  0x18   :  { %v125_v36 = vmax.f32 %v61_v22, %v109_v27  ;;  %v80_v41 = vld [vmem:[%s433_s2 + $0x78] sm:$0xff]  ;;  %v126_v42 = vmax.f32 %v62_v28, %v110_v32  ;;  %v64_v43 = vmax.f32 %v32_v39, %v48_v40  ;;  %v127_v45 = vmax.f32 %v63_v37, %v111_v38 }
  0x19   :  { %v96_v44 = vld [vmem:[%s434_s3 + $0x78] sm:$0xff] }
  0x1a   :  { %142 = vst.msk [vmem:[%s435_s4 + $0x60] sm:$0xff] %vm129_vm0, %v125_v36  ;;  %v112_v46 = vmax.f32 %v80_v41, %v96_v44  ;;  %143 = vst.msk [vmem:[%s435_s4 + $0x68] sm:$0xff] %vm129_vm0, %v126_v42 }
  0x1b   :  { %144 = vst.msk [vmem:[%s435_s4 + $0x70] sm:$0xff] %vm129_vm0, %v127_v45 }
  0x1c   :  { %v128_v47 = vmax.f32 %v64_v43, %v112_v46 }
  0x1e   :  { %145 = vst.msk [vmem:[%s435_s4 + $0x78] sm:$0xff] %vm129_vm0, %v128_v47 }

// kernel: aunet_encoder_forward.16
= control target key start
LH: loop header
LB: loop body
LE: loop exit
PB: predicated region body
PF: predicated region fallthrough
CT: control target
= control target key end

     0   :  { %s254_s0 = inlined_call_operand.vmem [shape: f32[128,128], index: 0, kind: input, shape index: {}, may-alias: {0,3}]   ;;  %s255_s1 = inlined_call_operand.vmem [shape: f32[1,128], index: 1, kind: input, shape index: {}]   ;;  %s256_s2 = inlined_call_operand.vmem [shape: f32[1,128], index: 2, kind: input, shape index: {}]   ;;  %s257_s3 = inlined_call_operand.vmem [shape: f32[128,128], index: 3, kind: output, shape index: {}, may-alias: {0,3}]  }
   0x1   :  { %v14_v0 = vld [vmem:[%s254_s0] sm:$0xff]  ;;  %v15_v4 = vld [vmem:[%s254_s0 + $0x8] sm:$0xff]  ;;  %v16_v5 = vld [vmem:[%s254_s0 + $0x10] sm:$0xff] }
   0x2   :  { %v112_v1 = vld [vmem:[%s255_s1] ss:$0 sm:$0xff]  ;;  %v17_v6 = vld [vmem:[%s254_s0 + $0x18] sm:$0xff]  ;;  %v19_v11 = vld [vmem:[%s254_s0 + $0x28] sm:$0xff] }
   0x3   :  { %v143_v2 = vld [vmem:[%s256_s2] ss:$0 sm:$0xff]  ;;  %v37_v3 = vmul.f32 %v112_v1, %v14_v0  ;;  %v38_v7 = vmul.f32 %v112_v1, %v15_v4  ;;  %v39_v8 = vmul.f32 %v112_v1, %v16_v5  ;;  %v40_v9 = vmul.f32 %v112_v1, %v17_v6  ;;  %v20_v12 = vld [vmem:[%s254_s0 + $0x30] sm:$0xff]  ;;  %v21_v17 = vld [vmem:[%s254_s0 + $0x38] sm:$0xff] }
   0x4   :  { %v18_v10 = vld [vmem:[%s254_s0 + $0x20] sm:$0xff]  ;;  %v42_v15 = vmul.f32 %v112_v1, %v19_v11  ;;  %v43_v16 = vmul.f32 %v112_v1, %v20_v12  ;;  %v44_v21 = vmul.f32 %v112_v1, %v21_v17  ;;  %v23_v27 = vld [vmem:[%s254_s0 + $0x48] sm:$0xff]  ;;  %v24_v28 = vld [vmem:[%s254_s0 + $0x50] sm:$0xff] }
   0x5   :  { %v60_v13 = vadd.f32 %v143_v2, %v37_v3  ;;  %v41_v14 = vmul.f32 %v112_v1, %v18_v10  ;;  %v61_v18 = vadd.f32 %v143_v2, %v38_v7  ;;  %v62_v19 = vadd.f32 %v143_v2, %v39_v8  ;;  %v22_v22 = vld [vmem:[%s254_s0 + $0x40] sm:$0xff]  ;;  %v25_v29 = vld [vmem:[%s254_s0 + $0x58] sm:$0xff]  ;;  %v27_v35 = vld [vmem:[%s254_s0 + $0x68] sm:$0xff] }
   0x6   :  { %v63_v20 = vadd.f32 %v143_v2, %v40_v9  ;;  %v65_v25 = vadd.f32 %v143_v2, %v42_v15  ;;  %v66_v26 = vadd.f32 %v143_v2, %v43_v16  ;;  %v67_v33 = vadd.f32 %v143_v2, %v44_v21  ;;  %v26_v34 = vld [vmem:[%s254_s0 + $0x60] sm:$0xff]  ;;  %v28_v36 = vld [vmem:[%s254_s0 + $0x70] sm:$0xff] }
   0x7   :  { %v76_v23 = vmax.f32 %v60_v13, 0.0  ;;  %v64_v24 = vadd.f32 %v143_v2, %v41_v14  ;;  %v77_v30 = vmax.f32 %v61_v18, 0.0  ;;  %v78_v31 = vmax.f32 %v62_v19, 0.0 }
   0x8   :  { %v79_v32 = vmax.f32 %v63_v20, 0.0  ;;  %v81_v38 = vmax.f32 %v65_v25, 0.0  ;;  %v82_v39 = vmax.f32 %v66_v26, 0.0  ;;  %v45_v40 = vmul.f32 %v112_v1, %v22_v22 }
   0x9   :  { %92 = vst [vmem:[%s257_s3] sm:$0xff] %v76_v23  ;;  %v80_v37 = vmax.f32 %v64_v24, 0.0  ;;  %v83_v42 = vmax.f32 %v67_v33, 0.0  ;;  %v46_v43 = vmul.f32 %v112_v1, %v23_v27  ;;  %v47_v44 = vmul.f32 %v112_v1, %v24_v28 }
   0xa   :  { %v48_v45 = vmul.f32 %v112_v1, %v25_v29  ;;  %v68_v46 = vadd.f32 %v143_v2, %v45_v40  ;;  %v49_v47 = vmul.f32 %v112_v1, %v26_v34  ;;  %v50_v48 = vmul.f32 %v112_v1, %v27_v35 }
   0xb   :  { %v51_v49 = vmul.f32 %v112_v1, %v28_v36  ;;  %v69_v50 = vadd.f32 %v143_v2, %v46_v43  ;;  %v70_v51 = vadd.f32 %v143_v2, %v47_v44 }
   0xc   :  { %v71_v52 = vadd.f32 %v143_v2, %v48_v45  ;;  %v84_v54 = vmax.f32 %v68_v46, 0.0  ;;  %v72_v55 = vadd.f32 %v143_v2, %v49_v47  ;;  %v73_v56 = vadd.f32 %v143_v2, %v50_v48 }
   0xd   :  { %v74_v57 = vadd.f32 %v143_v2, %v51_v49  ;;  %v85_v58 = vmax.f32 %v69_v50, 0.0  ;;  %v86_v59 = vmax.f32 %v70_v51, 0.0 }
   0xe   :  { %v87_v60 = vmax.f32 %v71_v52, 0.0  ;;  %v88_v62 = vmax.f32 %v72_v55, 0.0  ;;  %v89_v63 = vmax.f32 %v73_v56, 0.0 }
   0xf   :  { %v90_v0 = vmax.f32 %v74_v57, 0.0 }
  0x10   :  { %v29_v41 = vld [vmem:[%s254_s0 + $0x78] sm:$0xff] }
  0x11   :  { %93 = vst [vmem:[%s257_s3 + $0x8] sm:$0xff] %v77_v30  ;;  %94 = vst [vmem:[%s257_s3 + $0x10] sm:$0xff] %v78_v31  ;;  %v52_v53 = vmul.f32 %v112_v1, %v29_v41 }
  0x12   :  { %95 = vst [vmem:[%s257_s3 + $0x18] sm:$0xff] %v79_v32  ;;  %96 = vst [vmem:[%s257_s3 + $0x20] sm:$0xff] %v80_v37 }
  0x13   :  { %97 = vst [vmem:[%s257_s3 + $0x28] sm:$0xff] %v81_v38  ;;  %98 = vst [vmem:[%s257_s3 + $0x30] sm:$0xff] %v82_v39  ;;  %v75_v61 = vadd.f32 %v143_v2, %v52_v53 }
  0x14   :  { %99 = vst [vmem:[%s257_s3 + $0x38] sm:$0xff] %v83_v42  ;;  %100 = vst [vmem:[%s257_s3 + $0x40] sm:$0xff] %v84_v54 }
  0x15   :  { %101 = vst [vmem:[%s257_s3 + $0x48] sm:$0xff] %v85_v58  ;;  %102 = vst [vmem:[%s257_s3 + $0x50] sm:$0xff] %v86_v59  ;;  %v91_v1 = vmax.f32 %v75_v61, 0.0 }
  0x16   :  { %103 = vst [vmem:[%s257_s3 + $0x58] sm:$0xff] %v87_v60  ;;  %104 = vst [vmem:[%s257_s3 + $0x60] sm:$0xff] %v88_v62 }
  0x17   :  { %105 = vst [vmem:[%s257_s3 + $0x68] sm:$0xff] %v89_v63  ;;  %106 = vst [vmem:[%s257_s3 + $0x70] sm:$0xff] %v90_v0 }
  0x18   :  { %107 = vst [vmem:[%s257_s3 + $0x78] sm:$0xff] %v91_v1 }

// kernel: aunet_encoder_forward.15
= control target key start
LH: loop header
LB: loop body
LE: loop exit
PB: predicated region body
PF: predicated region fallthrough
CT: control target
= control target key end

     0   :  { %s590_s1 = inlined_call_operand.vmem [shape: f32[128,128], index: 1, kind: input, shape index: {}]   ;;  %s591_s0 = inlined_call_operand.vmem [shape: f32[128,128], index: 0, kind: input, shape index: {}]   ;;  %s592_s2 = inlined_call_operand.vmem [shape: f32[128,128], index: 2, kind: output, shape index: {0}]   ;;  %s593_s3 = inlined_call_operand.vmem [shape: f32[1,1,128], index: 3, kind: output, shape index: {1}]   ;;  %s594_s4 = inlined_call_operand.vmem [shape: f32[1,1,128], index: 4, kind: output, shape index: {2}]  }
   0x1   :  { %v30_v0 = vld [vmem:[%s590_s1] sm:$0xff]  ;;  %v31_v1 = vld [vmem:[%s590_s1 + $0x8] sm:$0xff]  ;;  %v32_v2 = vld [vmem:[%s590_s1 + $0x10] sm:$0xff] }
   0x2   :  { %v367_v3 = vpack.c.bf16 %v31_v1, %v30_v0  ;;  %v33_v4 = vld [vmem:[%s590_s1 + $0x18] sm:$0xff]  ;;  %v34_v6 = vld [vmem:[%s590_s1 + $0x20] sm:$0xff]  ;;  %v35_v7 = vld [vmem:[%s590_s1 + $0x28] sm:$0xff] }
   0x3   :  { %v371_v5 = vpack.c.bf16 %v33_v4, %v32_v2  ;;  %v375_v8 = vpack.c.bf16 %v35_v7, %v34_v6  ;;  %v14_v9 = vld [vmem:[%s591_s0] sm:$0xff]  ;;  %v36_v10 = vld [vmem:[%s590_s1 + $0x30] sm:$0xff]  ;;  %v37_v11 = vld [vmem:[%s590_s1 + $0x38] sm:$0xff] }
   0x4   :  { %368 = vmatprep.subr.bf16.mxu0 %v367_v3  ;;  %399 = vmatprep.subr.bf16.mxu1 %v367_v3  ;;  %v22_v12 = vld [vmem:[%s591_s0 + $0x40] sm:$0xff]  ;;  %v379_v13 = vpack.c.bf16 %v37_v11, %v36_v10  ;;  %v39_v15 = vld [vmem:[%s590_s1 + $0x48] sm:$0xff]  ;;  %v40_v17 = vld [vmem:[%s590_s1 + $0x50] sm:$0xff] }
   0x5   :  { %370 = vmatpush3.bf16.msra.mxu0 %v367_v3  ;;  %407 = vmatpush3.bf16.msra.mxu1 %v367_v3  ;;  %v38_v14 = vld [vmem:[%s590_s1 + $0x40] sm:$0xff]  ;;  %v41_v18 = vld [vmem:[%s590_s1 + $0x58] sm:$0xff]  ;;  %v43_v21 = vld [vmem:[%s590_s1 + $0x68] sm:$0xff] }
   0x6   :  { %372 = vmatprep.subr.bf16.mxu0 %v371_v5  ;;  %400 = vmatprep.subr.bf16.mxu1 %v371_v5  ;;  %v383_v16 = vpack.c.bf16 %v39_v15, %v38_v14  ;;  %v387_v19 = vpack.c.bf16 %v41_v18, %v40_v17  ;;  %v42_v20 = vld [vmem:[%s590_s1 + $0x60] sm:$0xff]  ;;  %v44_v23 = vld [vmem:[%s590_s1 + $0x70] sm:$0xff]  ;;  %v45_v24 = vld [vmem:[%s590_s1 + $0x78] sm:$0xff] }
   0x7   :  { %343 = vmatprep.mubr.f32.mxu0 %v14_v9  ;;  %355 = vmatprep.mubr.f32.mxu1 %v22_v12  ;;  %v391_v22 = vpack.c.bf16 %v43_v21, %v42_v20  ;;  %v395_v25 = vpack.c.bf16 %v45_v24, %v44_v23  ;;  %v15_v26 = vld [vmem:[%s591_s0 + $0x8] sm:$0xff]  ;;  %v16_v28 = vld [vmem:[%s591_s0 + $0x10] sm:$0xff]  ;;  %v17_v30 = vld [vmem:[%s591_s0 + $0x18] sm:$0xff] }
   0x8   :  { %v23_v27 = vld [vmem:[%s591_s0 + $0x48] sm:$0xff]  ;;  %v24_v29 = vld [vmem:[%s591_s0 + $0x50] sm:$0xff]  ;;  %v25_v31 = vld [vmem:[%s591_s0 + $0x58] sm:$0xff] }
   0x9   :  { %374 = vmatpush3.bf16.msra.mxu0 %v371_v5  ;;  %408 = vmatpush3.bf16.msra.mxu1 %v371_v5  ;;  %v18_v32 = vld [vmem:[%s591_s0 + $0x20] sm:$0xff]  ;;  %v19_v34 = vld [vmem:[%s591_s0 + $0x28] sm:$0xff]  ;;  %v20_v36 = vld [vmem:[%s591_s0 + $0x30] sm:$0xff] }
   0xa   :  { %376 = vmatprep.subr.bf16.mxu0 %v375_v8  ;;  %401 = vmatprep.subr.bf16.mxu1 %v375_v8  ;;  %v26_v33 = vld [vmem:[%s591_s0 + $0x60] sm:$0xff]  ;;  %v27_v35 = vld [vmem:[%s591_s0 + $0x68] sm:$0xff]  ;;  %v28_v37 = vld [vmem:[%s591_s0 + $0x70] sm:$0xff] }
   0xb   :  { %v21_v38 = vld [vmem:[%s591_s0 + $0x38] sm:$0xff] }
   0xc   :  { %v29_v39 = vld [vmem:[%s591_s0 + $0x78] sm:$0xff] }
   0xd   :  { %378 = vmatpush3.bf16.msra.mxu0 %v375_v8  ;;  %409 = vmatpush3.bf16.msra.mxu1 %v375_v8 }
   0xe   :  { %380 = vmatprep.subr.bf16.mxu0 %v379_v13  ;;  %402 = vmatprep.subr.bf16.mxu1 %v379_v13 }
  0x11   :  { %382 = vmatpush3.bf16.msra.mxu0 %v379_v13  ;;  %410 = vmatpush3.bf16.msra.mxu1 %v379_v13 }
  0x12   :  { %384 = vmatprep.subr.bf16.mxu0 %v383_v16  ;;  %403 = vmatprep.subr.bf16.mxu1 %v383_v16 }
  0x15   :  { %386 = vmatpush3.bf16.msra.mxu0 %v383_v16  ;;  %411 = vmatpush3.bf16.msra.mxu1 %v383_v16 }
  0x16   :  { %388 = vmatprep.subr.bf16.mxu0 %v387_v19  ;;  %404 = vmatprep.subr.bf16.mxu1 %v387_v19 }
  0x19   :  { %390 = vmatpush3.bf16.msra.mxu0 %v387_v19  ;;  %412 = vmatpush3.bf16.msra.mxu1 %v387_v19 }
  0x1a   :  { %392 = vmatprep.subr.bf16.mxu0 %v391_v22  ;;  %405 = vmatprep.subr.bf16.mxu1 %v391_v22 }
  0x1d   :  { %394 = vmatpush3.bf16.msra.mxu0 %v391_v22  ;;  %413 = vmatpush3.bf16.msra.mxu1 %v391_v22 }
  0x1e   :  { %396 = vmatprep.subr.bf16.mxu0 %v395_v25  ;;  %406 = vmatprep.subr.bf16.mxu1 %v395_v25 }
  0x21   :  { %398 = vmatpush3.bf16.msra.mxu0 %v395_v25  ;;  %414 = vmatpush3.bf16.msra.mxu1 %v395_v25 }
  0x24   :  { %344 = vmatmul.mubr.f32.vlgmr.msra.gmra.mrb[0].mxu0 %v15_v26  ;;  %356 = vmatmul.mubr.f32.vlgmr.msra.gmra.mrb[0].mxu1 %v23_v27 }
  0x25   :  { %346 = vmatprep.mubr.f32.mxu0 %v16_v28  ;;  %358 = vmatprep.mubr.f32.mxu1 %v24_v29 }
  0x28   :  { %347 = vmatmul.mubr.f32.gmra.mrb[2].mxu0 %v17_v30  ;;  %359 = vmatmul.mubr.f32.gmra.mrb[2].mxu1 %v25_v31 }
  0x29   :  { %349 = vmatprep.mubr.f32.mxu0 %v18_v32  ;;  %361 = vmatprep.mubr.f32.mxu1 %v26_v33 }
  0x2c   :  { %350 = vmatmul.mubr.f32.gmra.mrb[4].mxu0 %v19_v34  ;;  %362 = vmatmul.mubr.f32.gmra.mrb[4].mxu1 %v27_v35 }
  0x2d   :  { %352 = vmatprep.mubr.f32.mxu0 %v20_v36  ;;  %364 = vmatprep.mubr.f32.mxu1 %v28_v37 }
  0x30   :  { %353 = vmatmul.mubr.f32.gmra.mrb[6].mxu0 %v21_v38  ;;  %365 = vmatmul.mubr.f32.gmra.mrb[6].mxu1 %v29_v39 }
  0xf7   :  { %v345_v40 = vpop.f32.mrb[0].mxu0  ;;  %v357_v41 = vpop.f32.mrb[0].mxu1 }
  0xf8   :  { %192 = vst [vmem:[%s592_s2 + $0x8] sm:$0xff] %v345_v40  ;;  %v230_v42 = vmul.f32 %v345_v40, %v345_v40  ;;  %v112_v43 = vpop.f32.mrb[1].mxu0  ;;  %200 = vst [vmem:[%s592_s2 + $0x48] sm:$0xff] %v357_v41  ;;  %v152_v44 = vpop.f32.mrb[1].mxu1  ;;  %v238_v16 = vmul.f32 %v357_v41, %v357_v41 }
  0xf9   :  { %191 = vst [vmem:[%s592_s2] sm:$0xff] %v112_v43  ;;  %v207_v45 = vadd.f32 %v345_v40, %v112_v43  ;;  %v229_v46 = vmul.f32 %v112_v43, %v112_v43  ;;  %199 = vst [vmem:[%s592_s2 + $0x40] sm:$0xff] %v152_v44  ;;  %v237_v13 = vmul.f32 %v152_v44, %v152_v44 }
  0xfb   :  { %v245_v47 = vadd.f32 %v230_v42, %v229_v46  ;;  %v348_v48 = vpop.f32.mrb[2].mxu0  ;;  %v360_v49 = vpop.f32.mrb[2].mxu1 }
  0xfc   :  { %194 = vst [vmem:[%s592_s2 + $0x18] sm:$0xff] %v348_v48  ;;  %v122_v50 = vpop.f32.mrb[3].mxu0  ;;  %202 = vst [vmem:[%s592_s2 + $0x58] sm:$0xff] %v360_v49  ;;  %v162_v51 = vpop.f32.mrb[3].mxu1  ;;  %v232_v54 = vmul.f32 %v348_v48, %v348_v48  ;;  %v240_v22 = vmul.f32 %v360_v49, %v360_v49 }
  0xfd   :  { %193 = vst [vmem:[%s592_s2 + $0x10] sm:$0xff] %v122_v50  ;;  %v208_v52 = vadd.f32 %v207_v45, %v122_v50  ;;  %v231_v53 = vmul.f32 %v122_v50, %v122_v50  ;;  %201 = vst [vmem:[%s592_s2 + $0x50] sm:$0xff] %v162_v51  ;;  %v239_v19 = vmul.f32 %v162_v51, %v162_v51 }
  0xff   :  { %v246_v55 = vadd.f32 %v245_v47, %v231_v53  ;;  %v351_v56 = vpop.f32.mrb[4].mxu0  ;;  %v209_v57 = vadd.f32 %v348_v48, %v208_v52  ;;  %v363_v58 = vpop.f32.mrb[4].mxu1 }
 0x100   :  { %196 = vst [vmem:[%s592_s2 + $0x28] sm:$0xff] %v351_v56  ;;  %v132_v59 = vpop.f32.mrb[5].mxu0  ;;  %204 = vst [vmem:[%s592_s2 + $0x68] sm:$0xff] %v363_v58  ;;  %v172_v60 = vpop.f32.mrb[5].mxu1  ;;  %v234_v0 = vmul.f32 %v351_v56, %v351_v56  ;;  %v242_v28 = vmul.f32 %v363_v58, %v363_v58 }
 0x101   :  { %195 = vst [vmem:[%s592_s2 + $0x20] sm:$0xff] %v132_v59  ;;  %v210_v61 = vadd.f32 %v209_v57, %v132_v59  ;;  %v233_v62 = vmul.f32 %v132_v59, %v132_v59  ;;  %v247_v63 = vadd.f32 %v246_v55, %v232_v54  ;;  %203 = vst [vmem:[%s592_s2 + $0x60] sm:$0xff] %v172_v60 }
 0x102   :  { %v241_v25 = vmul.f32 %v172_v60, %v172_v60 }
 0x103   :  { %v248_v1 = vadd.f32 %v247_v63, %v233_v62  ;;  %v354_v2 = vpop.f32.mrb[6].mxu0  ;;  %v211_v3 = vadd.f32 %v351_v56, %v210_v61  ;;  %v366_v4 = vpop.f32.mrb[6].mxu1 }
 0x104   :  { %198 = vst [vmem:[%s592_s2 + $0x38] sm:$0xff] %v354_v2  ;;  %v142_v5 = vpop.f32.mrb[7].mxu0  ;;  %206 = vst [vmem:[%s592_s2 + $0x78] sm:$0xff] %v366_v4  ;;  %v182_v6 = vpop.f32.mrb[7].mxu1  ;;  %v236_v10 = vmul.f32 %v354_v2, %v354_v2  ;;  %v244_v34 = vmul.f32 %v366_v4, %v366_v4 }
 0x105   :  { %197 = vst [vmem:[%s592_s2 + $0x30] sm:$0xff] %v142_v5  ;;  %v212_v7 = vadd.f32 %v211_v3, %v142_v5  ;;  %v235_v8 = vmul.f32 %v142_v5, %v142_v5  ;;  %v249_v9 = vadd.f32 %v248_v1, %v234_v0  ;;  %205 = vst [vmem:[%s592_s2 + $0x70] sm:$0xff] %v182_v6 }
 0x106   :  { %v243_v31 = vmul.f32 %v182_v6, %v182_v6 }
 0x107   :  { %v213_v11 = vadd.f32 %v354_v2, %v212_v7  ;;  %v250_v12 = vadd.f32 %v249_v9, %v235_v8 }
 0x109   :  { %v251_v14 = vadd.f32 %v250_v12, %v236_v10  ;;  %v214_v15 = vadd.f32 %v213_v11, %v152_v44 }
 0x10b   :  { %v252_v17 = vadd.f32 %v251_v14, %v237_v13  ;;  %v215_v18 = vadd.f32 %v357_v41, %v214_v15 }
 0x10d   :  { %v216_v20 = vadd.f32 %v215_v18, %v162_v51  ;;  %v253_v21 = vadd.f32 %v252_v17, %v238_v16 }
 0x10f   :  { %v254_v23 = vadd.f32 %v253_v21, %v239_v19  ;;  %v217_v24 = vadd.f32 %v360_v49, %v216_v20 }
 0x111   :  { %v218_v26 = vadd.f32 %v217_v24, %v172_v60  ;;  %v255_v27 = vadd.f32 %v254_v23, %v240_v22 }
 0x113   :  { %v256_v29 = vadd.f32 %v255_v27, %v241_v25  ;;  %v219_v30 = vadd.f32 %v363_v58, %v218_v26 }
 0x115   :  { %v220_v32 = vadd.f32 %v219_v30, %v182_v6  ;;  %v257_v33 = vadd.f32 %v256_v29, %v242_v28 }
 0x117   :  { %v221_v35 = vadd.f32 %v366_v4, %v220_v32  ;;  %v258_v36 = vadd.f32 %v257_v33, %v243_v31 }
 0x119   :  { %v222_v37 = vrot.slane %v221_v35, 4  ;;  %v259_v38 = vadd.f32 %v258_v36, %v244_v34 }
 0x11b   :  { %v223_v39 = vadd.f32 %v222_v37, %v221_v35  ;;  %v260_v40 = vrot.slane %v259_v38, 4 }
 0x11d   :  { %v224_v41 = vrot.slane %v223_v39, 2  ;;  %v261_v42 = vadd.f32 %v260_v40, %v259_v38 }
 0x11f   :  { %v225_v43 = vadd.f32 %v224_v41, %v223_v39  ;;  %v262_v44 = vrot.slane %v261_v42, 2 }
 0x121   :  { %v226_v45 = vrot.slane %v225_v43, 1  ;;  %v263_v46 = vadd.f32 %v262_v44, %v261_v42 }
 0x123   :  { %v227_v47 = vadd.f32 %v226_v45, %v225_v43  ;;  %v264_v48 = vrot.slane %v263_v46, 1 }
 0x125   :  { %228 = vst [vmem:[%s593_s3] sm:$0x1] %v227_v47  ;;  %v265_v49 = vadd.f32 %v264_v48, %v263_v46 }
 0x127   :  { %266 = vst [vmem:[%s594_s4] sm:$0x1] %v265_v49 }

// kernel: aunet_encoder_forward.17
= control target key start
LH: loop header
LB: loop body
LE: loop exit
PB: predicated region body
PF: predicated region fallthrough
CT: control target
= control target key end

     0   :  { %s728_s1 = inlined_call_operand.vmem [shape: f32[256,128], index: 1, kind: input, shape index: {}]   ;;  %s729_s0 = inlined_call_operand.vmem [shape: f32[128,256], index: 0, kind: input, shape index: {}]   ;;  %s730_s2 = inlined_call_operand.vmem [shape: f32[128,128], index: 2, kind: output, shape index: {0}]   ;;  %s731_s3 = inlined_call_operand.vmem [shape: f32[1,1,128], index: 3, kind: output, shape index: {1}]   ;;  %s732_s4 = inlined_call_operand.vmem [shape: f32[1,1,128], index: 4, kind: output, shape index: {2}]  }
   0x1   :  { %v62_v0 = vld [vmem:[%s728_s1 + $0x80] sm:$0xff]  ;;  %v63_v1 = vld [vmem:[%s728_s1 + $0x88] sm:$0xff]  ;;  %v64_v5 = vld [vmem:[%s728_s1 + $0x90] sm:$0xff] }
   0x2   :  { %v46_v2 = vld [vmem:[%s728_s1] sm:$0xff]  ;;  %v391_v3 = vpack.c.bf16 %v63_v1, %v62_v0  ;;  %v47_v4 = vld [vmem:[%s728_s1 + $0x8] sm:$0xff]  ;;  %v65_v6 = vld [vmem:[%s728_s1 + $0x98] sm:$0xff] }
   0x3   :  { %v393_v7 = vpack.c.bf16 %v47_v4, %v46_v2  ;;  %v395_v8 = vpack.c.bf16 %v65_v6, %v64_v5  ;;  %v48_v9 = vld [vmem:[%s728_s1 + $0x10] sm:$0xff]  ;;  %v49_v10 = vld [vmem:[%s728_s1 + $0x18] sm:$0xff]  ;;  %v66_v11 = vld [vmem:[%s728_s1 + $0xa0] sm:$0xff] }
   0x4   :  { %392 = vmatprep.subr.bf16.mxu0 %v391_v3  ;;  %v67_v12 = vld [vmem:[%s728_s1 + $0xa8] sm:$0xff]  ;;  %423 = vmatprep.subr.bf16.mxu1 %v391_v3  ;;  %v397_v13 = vpack.c.bf16 %v49_v10, %v48_v9  ;;  %v50_v15 = vld [vmem:[%s728_s1 + $0x20] sm:$0xff]  ;;  %v68_v17 = vld [vmem:[%s728_s1 + $0xb0] sm:$0xff] }
   0x5   :  { %394 = vmatpush3.bf16.msra.mxu0 %v393_v7  ;;  %431 = vmatpush3.bf16.msra.mxu1 %v393_v7  ;;  %v399_v14 = vpack.c.bf16 %v67_v12, %v66_v11  ;;  %v51_v16 = vld [vmem:[%s728_s1 + $0x28] sm:$0xff]  ;;  %v69_v18 = vld [vmem:[%s728_s1 + $0xb8] sm:$0xff]  ;;  %v52_v21 = vld [vmem:[%s728_s1 + $0x30] sm:$0xff] }
   0x6   :  { %396 = vmatprep.subr.bf16.mxu0 %v395_v8  ;;  %424 = vmatprep.subr.bf16.mxu1 %v395_v8  ;;  %v401_v19 = vpack.c.bf16 %v51_v16, %v50_v15  ;;  %v403_v20 = vpack.c.bf16 %v69_v18, %v68_v17  ;;  %v53_v22 = vld [vmem:[%s728_s1 + $0x38] sm:$0xff]  ;;  %v70_v23 = vld [vmem:[%s728_s1 + $0xc0] sm:$0xff]  ;;  %v71_v24 = vld [vmem:[%s728_s1 + $0xc8] sm:$0xff] }
   0x7   :  { %v15_v25 = vld [vmem:[%s729_s0 + $0x8] sm:$0xff]  ;;  %v405_v26 = vpack.c.bf16 %v53_v22, %v52_v21  ;;  %v407_v27 = vpack.c.bf16 %v71_v24, %v70_v23  ;;  %v54_v28 = vld [vmem:[%s728_s1 + $0x40] sm:$0xff]  ;;  %v72_v31 = vld [vmem:[%s728_s1 + $0xd0] sm:$0xff] }
   0x8   :  { %142 = vmatprep.mubr.f32.mxu0 %v15_v25  ;;  %v55_v29 = vld [vmem:[%s728_s1 + $0x48] sm:$0xff]  ;;  %v73_v32 = vld [vmem:[%s728_s1 + $0xd8] sm:$0xff]  ;;  %v56_v35 = vld [vmem:[%s728_s1 + $0x50] sm:$0xff] }
   0x9   :  { %398 = vmatpush3.bf16.msra.mxu0 %v397_v13  ;;  %432 = vmatpush3.bf16.msra.mxu1 %v397_v13  ;;  %v31_v30 = vld [vmem:[%s729_s0 + $0x88] sm:$0xff]  ;;  %v409_v33 = vpack.c.bf16 %v55_v29, %v54_v28  ;;  %v411_v34 = vpack.c.bf16 %v73_v32, %v72_v31  ;;  %v57_v36 = vld [vmem:[%s728_s1 + $0x58] sm:$0xff]  ;;  %v74_v37 = vld [vmem:[%s728_s1 + $0xe0] sm:$0xff] }
   0xa   :  { %400 = vmatprep.subr.bf16.mxu0 %v399_v14  ;;  %425 = vmatprep.subr.bf16.mxu1 %v399_v14  ;;  %v75_v38 = vld [vmem:[%s728_s1 + $0xe8] sm:$0xff]  ;;  %v413_v39 = vpack.c.bf16 %v57_v36, %v56_v35  ;;  %v58_v41 = vld [vmem:[%s728_s1 + $0x60] sm:$0xff]  ;;  %v76_v43 = vld [vmem:[%s728_s1 + $0xf0] sm:$0xff] }
   0xb   :  { %182 = vmatprep.mubr.f32.mxu1 %v31_v30  ;;  %v415_v40 = vpack.c.bf16 %v75_v38, %v74_v37  ;;  %v59_v42 = vld [vmem:[%s728_s1 + $0x68] sm:$0xff]  ;;  %v77_v44 = vld [vmem:[%s728_s1 + $0xf8] sm:$0xff]  ;;  %v60_v47 = vld [vmem:[%s728_s1 + $0x70] sm:$0xff] }
   0xc   :  { %v417_v45 = vpack.c.bf16 %v59_v42, %v58_v41  ;;  %v419_v46 = vpack.c.bf16 %v77_v44, %v76_v43  ;;  %v61_v48 = vld [vmem:[%s728_s1 + $0x78] sm:$0xff]  ;;  %v14_v50 = vld [vmem:[%s729_s0] sm:$0xff]  ;;  %v16_v54 = vld [vmem:[%s729_s0 + $0x10] sm:$0xff] }
   0xd   :  { %402 = vmatpush3.bf16.msra.mxu0 %v401_v19  ;;  %433 = vmatpush3.bf16.msra.mxu1 %v401_v19  ;;  %v421_v49 = vpack.c.bf16 %v61_v48, %v60_v47  ;;  %v30_v51 = vld [vmem:[%s729_s0 + $0x80] sm:$0xff]  ;;  %v17_v52 = vld [vmem:[%s729_s0 + $0x18] sm:$0xff]  ;;  %v32_v55 = vld [vmem:[%s729_s0 + $0x90] sm:$0xff] }
   0xe   :  { %404 = vmatprep.subr.bf16.mxu0 %v403_v20  ;;  %426 = vmatprep.subr.bf16.mxu1 %v403_v20  ;;  %v33_v53 = vld [vmem:[%s729_s0 + $0x98] sm:$0xff]  ;;  %v19_v56 = vld [vmem:[%s729_s0 + $0x28] sm:$0xff]  ;;  %v18_v58 = vld [vmem:[%s729_s0 + $0x20] sm:$0xff] }
   0xf   :  { %v35_v57 = vld [vmem:[%s729_s0 + $0xa8] sm:$0xff]  ;;  %v34_v59 = vld [vmem:[%s729_s0 + $0xa0] sm:$0xff]  ;;  %v21_v60 = vld [vmem:[%s729_s0 + $0x38] sm:$0xff] }
  0x10   :  { %v37_v61 = vld [vmem:[%s729_s0 + $0xb8] sm:$0xff]  ;;  %v20_v62 = vld [vmem:[%s729_s0 + $0x30] sm:$0xff]  ;;  %v23_v0 = vld [vmem:[%s729_s0 + $0x48] sm:$0xff] }
  0x11   :  { %406 = vmatpush3.bf16.msra.mxu0 %v405_v26  ;;  %434 = vmatpush3.bf16.msra.mxu1 %v405_v26  ;;  %v36_v63 = vld [vmem:[%s729_s0 + $0xb0] sm:$0xff]  ;;  %v39_v1 = vld [vmem:[%s729_s0 + $0xc8] sm:$0xff]  ;;  %v22_v2 = vld [vmem:[%s729_s0 + $0x40] sm:$0xff] }
  0x12   :  { %408 = vmatprep.subr.bf16.mxu0 %v407_v27  ;;  %427 = vmatprep.subr.bf16.mxu1 %v407_v27  ;;  %v38_v3 = vld [vmem:[%s729_s0 + $0xc0] sm:$0xff]  ;;  %v25_v4 = vld [vmem:[%s729_s0 + $0x58] sm:$0xff]  ;;  %v24_v6 = vld [vmem:[%s729_s0 + $0x50] sm:$0xff] }
  0x13   :  { %v41_v5 = vld [vmem:[%s729_s0 + $0xd8] sm:$0xff]  ;;  %v40_v7 = vld [vmem:[%s729_s0 + $0xd0] sm:$0xff]  ;;  %v27_v8 = vld [vmem:[%s729_s0 + $0x68] sm:$0xff] }
  0x14   :  { %v43_v9 = vld [vmem:[%s729_s0 + $0xe8] sm:$0xff]  ;;  %v26_v10 = vld [vmem:[%s729_s0 + $0x60] sm:$0xff]  ;;  %v29_v12 = vld [vmem:[%s729_s0 + $0x78] sm:$0xff] }
  0x15   :  { %410 = vmatpush3.bf16.msra.mxu0 %v409_v33  ;;  %435 = vmatpush3.bf16.msra.mxu1 %v409_v33  ;;  %v42_v11 = vld [vmem:[%s729_s0 + $0xe0] sm:$0xff]  ;;  %v45_v13 = vld [vmem:[%s729_s0 + $0xf8] sm:$0xff]  ;;  %v28_v14 = vld [vmem:[%s729_s0 + $0x70] sm:$0xff] }
  0x16   :  { %412 = vmatprep.subr.bf16.mxu0 %v411_v34  ;;  %428 = vmatprep.subr.bf16.mxu1 %v411_v34  ;;  %v44_v15 = vld [vmem:[%s729_s0 + $0xf0] sm:$0xff] }
  0x19   :  { %414 = vmatpush3.bf16.msra.mxu0 %v413_v39  ;;  %436 = vmatpush3.bf16.msra.mxu1 %v413_v39 }
  0x1a   :  { %416 = vmatprep.subr.bf16.mxu0 %v415_v40  ;;  %429 = vmatprep.subr.bf16.mxu1 %v415_v40 }
  0x1d   :  { %418 = vmatpush3.bf16.msra.mxu0 %v417_v45  ;;  %437 = vmatpush3.bf16.msra.mxu1 %v417_v45 }
  0x1e   :  { %420 = vmatprep.subr.bf16.mxu0 %v419_v46  ;;  %430 = vmatprep.subr.bf16.mxu1 %v419_v46 }
  0x21   :  { %422 = vmatpush3.bf16.msra.mxu0 %v421_v49  ;;  %438 = vmatpush3.bf16.msra.mxu1 %v421_v49 }
  0x24   :  { %143 = vmatmul.mubr.f32.vlgmr.msra.gmra.mrb[0].mxu0 %v14_v50  ;;  %183 = vmatmul.mubr.f32.vlgmr.msra.gmra.mrb[0].mxu1 %v30_v51 }
  0x25   :  { %147 = vmatprep.mubr.f32.mxu0 %v17_v52  ;;  %187 = vmatprep.mubr.f32.mxu1 %v33_v53 }
  0x28   :  { %148 = vmatmul.mubr.f32.gmra.mrb[2].mxu0 %v16_v54  ;;  %188 = vmatmul.mubr.f32.gmra.mrb[2].mxu1 %v32_v55 }
  0x29   :  { %152 = vmatprep.mubr.f32.mxu0 %v19_v56  ;;  %192 = vmatprep.mubr.f32.mxu1 %v35_v57 }
  0x2c   :  { %153 = vmatmul.mubr.f32.gmra.mrb[4].mxu0 %v18_v58  ;;  %193 = vmatmul.mubr.f32.gmra.mrb[4].mxu1 %v34_v59 }
  0x2d   :  { %157 = vmatprep.mubr.f32.mxu0 %v21_v60  ;;  %197 = vmatprep.mubr.f32.mxu1 %v37_v61 }
  0x30   :  { %158 = vmatmul.mubr.f32.gmra.mrb[6].mxu0 %v20_v62  ;;  %198 = vmatmul.mubr.f32.gmra.mrb[6].mxu1 %v36_v63 }
  0x31   :  { %162 = vmatprep.mubr.f32.mxu0 %v23_v0  ;;  %202 = vmatprep.mubr.f32.mxu1 %v39_v1 }
  0x34   :  { %163 = vmatmul.mubr.f32.gmra.mrb[8].mxu0 %v22_v2  ;;  %203 = vmatmul.mubr.f32.gmra.mrb[8].mxu1 %v38_v3 }
  0x35   :  { %167 = vmatprep.mubr.f32.mxu0 %v25_v4  ;;  %207 = vmatprep.mubr.f32.mxu1 %v41_v5 }
  0x38   :  { %168 = vmatmul.mubr.f32.gmra.mrb[10].mxu0 %v24_v6  ;;  %208 = vmatmul.mubr.f32.gmra.mrb[10].mxu1 %v40_v7 }
  0x39   :  { %172 = vmatprep.mubr.f32.mxu0 %v27_v8  ;;  %212 = vmatprep.mubr.f32.mxu1 %v43_v9 }
  0x3c   :  { %173 = vmatmul.mubr.f32.gmra.mrb[12].mxu0 %v26_v10  ;;  %213 = vmatmul.mubr.f32.gmra.mrb[12].mxu1 %v42_v11 }
  0x3d   :  { %177 = vmatprep.mubr.f32.mxu0 %v29_v12  ;;  %217 = vmatprep.mubr.f32.mxu1 %v45_v13 }
  0x40   :  { %178 = vmatmul.mubr.f32.gmra.mrb[14].mxu0 %v28_v14  ;;  %218 = vmatmul.mubr.f32.gmra.mrb[14].mxu1 %v44_v15 }
  0xf7   :  { %v343_v16 = vpop.f32.mrb[0].mxu0  ;;  %v367_v17 = vpop.f32.mrb[0].mxu1 }
  0xf8   :  { %v344_v18 = vpop.f32.mrb[1].mxu0  ;;  %v368_v19 = vpop.f32.mrb[1].mxu1 }
  0xf9   :  { %v345_v20 = vadd.f32 %v344_v18, %v343_v16  ;;  %v656_v21 = vadd.f32 %v368_v19, %v367_v17 }
  0xfb   :  { %223 = vst [vmem:[%s730_s2] sm:$0xff] %v345_v20  ;;  %v346_v22 = vpop.f32.mrb[2].mxu0  ;;  %231 = vst [vmem:[%s730_s2 + $0x40] sm:$0xff] %v656_v21  ;;  %v370_v23 = vpop.f32.mrb[2].mxu1  ;;  %v261_v28 = vmul.f32 %v345_v20, %v345_v20 }
  0xfc   :  { %v347_v24 = vpop.f32.mrb[3].mxu0  ;;  %v371_v25 = vpop.f32.mrb[3].mxu1 }
  0xfd   :  { %v348_v26 = vadd.f32 %v347_v24, %v346_v22  ;;  %v665_v27 = vadd.f32 %v371_v25, %v370_v23  ;;  %v269_v22 = vmul.f32 %v656_v21, %v656_v21 }
  0xff   :  { %224 = vst [vmem:[%s730_s2 + $0x8] sm:$0xff] %v348_v26  ;;  %v239_v29 = vadd.f32 %v348_v26, %v345_v20  ;;  %v262_v30 = vmul.f32 %v348_v26, %v348_v26  ;;  %v349_v31 = vpop.f32.mrb[4].mxu0  ;;  %232 = vst [vmem:[%s730_s2 + $0x48] sm:$0xff] %v665_v27  ;;  %v373_v32 = vpop.f32.mrb[4].mxu1  ;;  %v270_v25 = vmul.f32 %v665_v27, %v665_v27 }
 0x100   :  { %v350_v33 = vpop.f32.mrb[5].mxu0  ;;  %v374_v34 = vpop.f32.mrb[5].mxu1 }
 0x101   :  { %v277_v35 = vadd.f32 %v262_v30, %v261_v28  ;;  %v351_v36 = vadd.f32 %v350_v33, %v349_v31  ;;  %v674_v37 = vadd.f32 %v374_v34, %v373_v32 }
 0x103   :  { %225 = vst [vmem:[%s730_s2 + $0x10] sm:$0xff] %v351_v36  ;;  %v240_v38 = vadd.f32 %v351_v36, %v239_v29  ;;  %v263_v39 = vmul.f32 %v351_v36, %v351_v36  ;;  %v352_v40 = vpop.f32.mrb[6].mxu0  ;;  %233 = vst [vmem:[%s730_s2 + $0x50] sm:$0xff] %v674_v37  ;;  %v376_v41 = vpop.f32.mrb[6].mxu1  ;;  %v271_v29 = vmul.f32 %v674_v37, %v674_v37 }
 0x104   :  { %v353_v42 = vpop.f32.mrb[7].mxu0  ;;  %v377_v43 = vpop.f32.mrb[7].mxu1 }
 0x105   :  { %v278_v44 = vadd.f32 %v277_v35, %v263_v39  ;;  %v354_v45 = vadd.f32 %v353_v42, %v352_v40  ;;  %v378_v46 = vadd.f32 %v377_v43, %v376_v41 }
 0x107   :  { %226 = vst [vmem:[%s730_s2 + $0x18] sm:$0xff] %v354_v45  ;;  %v241_v47 = vadd.f32 %v354_v45, %v240_v38  ;;  %v264_v48 = vmul.f32 %v354_v45, %v354_v45  ;;  %v355_v49 = vpop.f32.mrb[8].mxu0  ;;  %234 = vst [vmem:[%s730_s2 + $0x58] sm:$0xff] %v378_v46  ;;  %v379_v50 = vpop.f32.mrb[8].mxu1  ;;  %v272_v32 = vmul.f32 %v378_v46, %v378_v46 }
 0x108   :  { %v356_v51 = vpop.f32.mrb[9].mxu0  ;;  %v380_v52 = vpop.f32.mrb[9].mxu1 }
 0x109   :  { %v279_v53 = vadd.f32 %v278_v44, %v264_v48  ;;  %v357_v54 = vadd.f32 %v356_v51, %v355_v49  ;;  %v381_v55 = vadd.f32 %v380_v52, %v379_v50 }
 0x10b   :  { %227 = vst [vmem:[%s730_s2 + $0x20] sm:$0xff] %v357_v54  ;;  %v242_v56 = vadd.f32 %v357_v54, %v241_v47  ;;  %v265_v57 = vmul.f32 %v357_v54, %v357_v54  ;;  %v358_v58 = vpop.f32.mrb[10].mxu0  ;;  %235 = vst [vmem:[%s730_s2 + $0x60] sm:$0xff] %v381_v55  ;;  %v382_v59 = vpop.f32.mrb[10].mxu1  ;;  %v273_v36 = vmul.f32 %v381_v55, %v381_v55 }
 0x10c   :  { %v359_v60 = vpop.f32.mrb[11].mxu0  ;;  %v383_v61 = vpop.f32.mrb[11].mxu1 }
 0x10d   :  { %v280_v62 = vadd.f32 %v279_v53, %v265_v57  ;;  %v360_v63 = vadd.f32 %v359_v60, %v358_v58  ;;  %v384_v0 = vadd.f32 %v383_v61, %v382_v59 }
 0x10f   :  { %228 = vst [vmem:[%s730_s2 + $0x28] sm:$0xff] %v360_v63  ;;  %v243_v1 = vadd.f32 %v360_v63, %v242_v56  ;;  %v266_v2 = vmul.f32 %v360_v63, %v360_v63  ;;  %v361_v3 = vpop.f32.mrb[12].mxu0  ;;  %236 = vst [vmem:[%s730_s2 + $0x68] sm:$0xff] %v384_v0  ;;  %v385_v4 = vpop.f32.mrb[12].mxu1  ;;  %v274_v40 = vmul.f32 %v384_v0, %v384_v0 }
 0x110   :  { %v362_v5 = vpop.f32.mrb[13].mxu0  ;;  %v386_v6 = vpop.f32.mrb[13].mxu1 }
 0x111   :  { %v281_v7 = vadd.f32 %v280_v62, %v266_v2  ;;  %v363_v8 = vadd.f32 %v362_v5, %v361_v3  ;;  %v387_v9 = vadd.f32 %v386_v6, %v385_v4 }
 0x113   :  { %229 = vst [vmem:[%s730_s2 + $0x30] sm:$0xff] %v363_v8  ;;  %v244_v10 = vadd.f32 %v363_v8, %v243_v1  ;;  %v267_v11 = vmul.f32 %v363_v8, %v363_v8  ;;  %v364_v12 = vpop.f32.mrb[14].mxu0  ;;  %237 = vst [vmem:[%s730_s2 + $0x70] sm:$0xff] %v387_v9  ;;  %v388_v13 = vpop.f32.mrb[14].mxu1  ;;  %v275_v43 = vmul.f32 %v387_v9, %v387_v9 }
 0x114   :  { %v365_v14 = vpop.f32.mrb[15].mxu0  ;;  %v389_v15 = vpop.f32.mrb[15].mxu1 }
 0x115   :  { %v282_v16 = vadd.f32 %v281_v7, %v267_v11  ;;  %v366_v17 = vadd.f32 %v365_v14, %v364_v12  ;;  %v390_v18 = vadd.f32 %v389_v15, %v388_v13 }
 0x117   :  { %230 = vst [vmem:[%s730_s2 + $0x38] sm:$0xff] %v366_v17  ;;  %v245_v19 = vadd.f32 %v366_v17, %v244_v10  ;;  %v268_v20 = vmul.f32 %v366_v17, %v366_v17  ;;  %238 = vst [vmem:[%s730_s2 + $0x78] sm:$0xff] %v390_v18 }
 0x119   :  { %v246_v23 = vadd.f32 %v656_v21, %v245_v19  ;;  %v283_v24 = vadd.f32 %v282_v16, %v268_v20 }
 0x11b   :  { %v247_v26 = vadd.f32 %v665_v27, %v246_v23  ;;  %v284_v28 = vadd.f32 %v283_v24, %v269_v22  ;;  %v276_v27 = vmul.f32 %v390_v18, %v390_v18 }
 0x11d   :  { %v285_v30 = vadd.f32 %v284_v28, %v270_v25  ;;  %v248_v31 = vadd.f32 %v674_v37, %v247_v26 }
 0x11f   :  { %v249_v33 = vadd.f32 %v378_v46, %v248_v31  ;;  %v286_v34 = vadd.f32 %v285_v30, %v271_v29 }
 0x121   :  { %v250_v35 = vadd.f32 %v381_v55, %v249_v33  ;;  %v287_v38 = vadd.f32 %v286_v34, %v272_v32 }
 0x123   :  { %v288_v21 = vadd.f32 %v287_v38, %v273_v36  ;;  %v251_v39 = vadd.f32 %v384_v0, %v250_v35 }
 0x125   :  { %v289_v41 = vadd.f32 %v288_v21, %v274_v40  ;;  %v252_v42 = vadd.f32 %v387_v9, %v251_v39 }
 0x127   :  { %v290_v44 = vadd.f32 %v289_v41, %v275_v43  ;;  %v253_v45 = vadd.f32 %v390_v18, %v252_v42 }
 0x129   :  { %v254_v47 = vrot.slane %v253_v45, 4  ;;  %v291_v48 = vadd.f32 %v290_v44, %v276_v27 }
 0x12b   :  { %v255_v49 = vadd.f32 %v254_v47, %v253_v45  ;;  %v292_v50 = vrot.slane %v291_v48, 4 }
 0x12d   :  { %v256_v37 = vrot.slane %v255_v49, 2  ;;  %v293_v51 = vadd.f32 %v292_v50, %v291_v48 }
 0x12f   :  { %v257_v46 = vadd.f32 %v256_v37, %v255_v49  ;;  %v294_v52 = vrot.slane %v293_v51, 2 }
 0x131   :  { %v258_v53 = vrot.slane %v257_v46, 1  ;;  %v295_v54 = vadd.f32 %v294_v52, %v293_v51 }
 0x133   :  { %v259_v55 = vadd.f32 %v258_v53, %v257_v46  ;;  %v296_v56 = vrot.slane %v295_v54, 1 }
 0x135   :  { %260 = vst [vmem:[%s731_s3] sm:$0x1] %v259_v55  ;;  %v297_v57 = vadd.f32 %v296_v56, %v295_v54 }
 0x137   :  { %298 = vst [vmem:[%s732_s4] sm:$0x1] %v297_v57 }

// kernel: aunet_encoder_forward.19
= control target key start
LH: loop header
LB: loop body
LE: loop exit
PB: predicated region body
PF: predicated region fallthrough
CT: control target
= control target key end

     0   :  { %vm46_vm0 = vcmask 130048   ;;  %s186_s0 = inlined_call_operand.vmem [shape: f32[32,16], index: 0, kind: input, shape index: {}]   ;;  %s187_s1 = inlined_call_operand.vmem [shape: f32[32,16], index: 1, kind: input, shape index: {}]   ;;  %s188_s2 = inlined_call_operand.vmem [shape: f32[32,16], index: 2, kind: input, shape index: {}]   ;;  %s189_s3 = inlined_call_operand.vmem [shape: f32[32,16], index: 3, kind: input, shape index: {}]   ;;  %s190_s4 = inlined_call_operand.hbm [shape: f32[32,16], index: 4, kind: output, shape index: {}]  }
   0x1   :  { %v18_v0 = vld [vmem:[%s186_s0] sm:$0xff]  ;;  %v19_v5 = vld [vmem:[%s186_s0 + $0x8] sm:$0xff]  ;;  %v20_v11 = vld [vmem:[%s186_s0 + $0x10] sm:$0xff] }
   0x2   :  { %v22_v1 = vld [vmem:[%s187_s1] sm:$0xff]  ;;  %v23_v6 = vld [vmem:[%s187_s1 + $0x8] sm:$0xff]  ;;  %v24_v13 = vld [vmem:[%s187_s1 + $0x10] sm:$0xff] }
   0x3   :  { %v30_v2 = vld [vmem:[%s188_s2] sm:$0xff]  ;;  %v26_v3 = vmax.f32 %v18_v0, %v22_v1  ;;  %v27_v8 = vmax.f32 %v19_v5, %v23_v6  ;;  %v31_v9 = vld [vmem:[%s188_s2 + $0x8] sm:$0xff]  ;;  %v32_v14 = vld [vmem:[%s188_s2 + $0x10] sm:$0xff]  ;;  %v28_v17 = vmax.f32 %v20_v11, %v24_v13 }
   0x4   :  { %v34_v4 = vld [vmem:[%s189_s3] sm:$0xff]  ;;  %v35_v10 = vld [vmem:[%s189_s3 + $0x8] sm:$0xff]  ;;  %v36_v15 = vld [vmem:[%s189_s3 + $0x10] sm:$0xff] }
   0x5   :  { %v38_v7 = vmax.f32 %v30_v2, %v34_v4  ;;  %v39_v12 = vmax.f32 %v31_v9, %v35_v10  ;;  %v40_v18 = vmax.f32 %v32_v14, %v36_v15  ;;  %v21_v19 = vld [vmem:[%s186_s0 + $0x18] sm:$0xff] }
   0x6   :  { %v25_v20 = vld [vmem:[%s187_s1 + $0x18] sm:$0xff] }
   0x7   :  { %v42_v16 = vmax.f32 %v26_v3, %v38_v7  ;;  %v33_v21 = vld [vmem:[%s188_s2 + $0x18] sm:$0xff]  ;;  %v43_v22 = vmax.f32 %v27_v8, %v39_v12  ;;  %v29_v23 = vmax.f32 %v21_v19, %v25_v20 }
   0x8   :  { %v37_v24 = vld [vmem:[%s189_s3 + $0x18] sm:$0xff] }
   0x9   :  { %9 = vsyncpa [#allocation3], 0  ;;  %s94_s21 = smov [#allocation2]   ;;  %47 = vst.msk [vmem:[#allocation2] sm:$0xff] %vm46_vm0, %v42_v16  ;;  %v44_v25 = vmax.f32 %v28_v17, %v40_v18  ;;  %v41_v26 = vmax.f32 %v33_v21, %v37_v24 }
   0xa   :  { %s56_s22 = sshll.u32 %s94_s21, 4  ;;  %48 = vst.msk [vmem:[#allocation2 + $0x8] sm:$0xff] %vm46_vm0, %v43_v22  ;;  %s57_s22 = int_to_ptr.vmem [resolvable:$true] %s56_s22 }
   0xb   :  { %49 = vst.msk [vmem:[#allocation2 + $0x10] sm:$0xff] %vm46_vm0, %v44_v25  ;;  %v45_v27 = vmax.f32 %v29_v23, %v41_v26  ;;  %s70_s0 = scalar_lea.vmem %s57_s22, 512  ;;  %p75_p1 = scmp.lt.s32.totalorder %s57_s22, %s57_s22 }
   0xc   :  { %p71_p0 = scmp.ne.s32.totalorder %s57_s22, %s70_s0  ;;  %p76_p2 = scmp.lt.s32.totalorder %s70_s0, %s70_s0 }
   0xd   :  { %50 = vst.msk [vmem:[#allocation2 + $0x18] sm:$0xff] %vm46_vm0, %v45_v27 }
   0xe   :  { %p77_p3 = por %p76_p2, %p75_p1 }
  0x10   :  { %p78_p4 = pnand %p77_p3, %p71_p0 }
  0x12   :  { %81 = shalt.err (!%p78_p4)
}
  0x13   :  { %s82_s3 = scalar_lea.hbm %s190_s4, 512 }
  0x14   :  { %p83_p5 = scmp.ne.s32.totalorder %s190_s4, %s82_s3  ;;  %p86_p6 = scmp.lt.u32.totalorder %s82_s3, %s190_s4 }
  0x16   :  { %p88_p7 = pnand %p86_p6, %p83_p5 }
  0x18   :  { %91 = shalt.err (!%p88_p7)
}
  0x19   :  { %s95_s27 = smov 128   ;;  %s96_s28 = smov 8  }
  0x1a   :  { %62 = dma.vmem_to_hbm [thread:$0]  %s57_s22, 512, %s190_s4, [#allocation3], %s95_s27, %s95_s27, %s96_s28  }
  0x1b   :  { %92 = dma.done.wait [#allocation3], 512  }
  0x1c   :  { %93 = vsyncadd [#allocation3], 4294966784 }
  0x1d   :  { %66 = vsyncpa [#allocation3], 1 }

</bundles_post_ra>
